<compile_context>
chip_gen: v7x
topology: tpu7x:2x2x1
jax: 0.10.0
libtpu: 0.0.40
codegen_flags: <defaults>
</compile_context>

<pallas_src>
import functools

import jax
import jax.numpy as jnp
from jax.experimental import pallas as pl
from jax.experimental.pallas import tpu as pltpu


# ----------------------------- config (small) ------------------------------
BATCH = 2
IN_CH = 3
IMAGE_SIZE = 16
PATCH = 8
WIDTH = 32
HEADS = 4
LAYERS = 2
MLP_HIDDEN = 4 * WIDTH
GRID = IMAGE_SIZE // PATCH           # 2
NUM_PATCHES = GRID * GRID            # 4
SEQ = NUM_PATCHES + 1                # 5 (CLS + patches)
HEAD_DIM = WIDTH // HEADS            # 8
DTYPE = jnp.float32
LN_EPS = 1e-5


# ------------------------- fused ViT forward kernel ------------------------
def _fused_vit_kernel(
    # per-forward inputs (constant block across the layer grid)
    patches_ref, patch_w_ref, emb_ref, bias_ref,
    lnpre_g_ref, lnpre_b_ref, lnpost_g_ref, lnpost_b_ref,
    # per-layer weights (leading L axis selected by the grid index_map)
    ln1_g_ref, ln1_b_ref, qkv_w_ref, qkv_b_ref, out_w_ref, out_b_ref,
    ln2_g_ref, ln2_b_ref, fc1_w_ref, fc1_b_ref, fc2_w_ref, fc2_b_ref,
    # output + VMEM-resident residual stream
    o_ref, h_ref,
    *, heads, eps):
    layer = pl.program_id(0)
    width = out_w_ref.shape[-1]
    head_dim = width // heads
    scale = 1.0 / (head_dim ** 0.5)

    def _ln(x, g_ref, b_ref):
        x = x.astype(jnp.float32)
        mu = jnp.mean(x, axis=-1, keepdims=True)
        xc = x - mu
        var = jnp.mean(xc * xc, axis=-1, keepdims=True)
        return xc * jax.lax.rsqrt(var + eps) * g_ref[...] + b_ref[...]

    # ---- embed + ln_pre (only on the first grid step) ----
    @pl.when(layer == 0)
    def _embed():
        tok = jnp.dot(patches_ref[...], patch_w_ref[...],
                      preferred_element_type=jnp.float32)        # [B*S, D]
        h_ref[...] = _ln(tok + emb_ref[...].astype(jnp.float32),
                         lnpre_g_ref, lnpre_b_ref)

    h = h_ref[...]                                               # [B*S, D] f32
    bs = h.shape[0]

    # ---- attention block: x += out_proj(MHA(ln_1(x))) ----
    y = _ln(h, ln1_g_ref, ln1_b_ref)
    qkv = jnp.dot(y, qkv_w_ref[...],
                  preferred_element_type=jnp.float32) + qkv_b_ref[...]  # [B*S, 3D]
    q = qkv[:, :width] * scale
    k = qkv[:, width:2 * width]
    v = qkv[:, 2 * width:]
    w_out = out_w_ref[...]                                       # [D, D]
    bias = bias_ref[...]                                         # [B*S, B*S] block-diag

    attn = jnp.zeros((bs, width), jnp.float32)
    for hh in range(heads):                                      # static unroll, lane slices
        sl = slice(hh * head_dim, (hh + 1) * head_dim)
        s = jax.lax.dot_general(q[:, sl], k[:, sl], (((1,), (1,)), ((), ())),
                                preferred_element_type=jnp.float32)
        s = s + bias
        s = s - jnp.max(s, axis=-1, keepdims=True)
        p = jnp.exp(s)
        p = p * pl.reciprocal(jnp.sum(p, axis=-1, keepdims=True), approx=True)
        oh = jnp.dot(p, v[:, sl], preferred_element_type=jnp.float32)   # [B*S, Dh]
        # head-merge + out-projection fused: accumulate o_h @ W_out[h-slice, :]
        attn = attn + jnp.dot(oh, w_out[sl, :],
                              preferred_element_type=jnp.float32)
    h = h + attn + out_b_ref[...]

    # ---- MLP block: x += fc2(QuickGELU(fc1(ln_2(x)))) ----
    y = _ln(h, ln2_g_ref, ln2_b_ref)
    hid = jnp.dot(y, fc1_w_ref[...],
                  preferred_element_type=jnp.float32) + fc1_b_ref[...]
    hid = hid * jax.nn.sigmoid(1.702 * hid)                      # QuickGELU (CLIP)
    h = h + jnp.dot(hid, fc2_w_ref[...],
                    preferred_element_type=jnp.float32) + fc2_b_ref[...]
    h_ref[...] = h

    # ---- ln_post + single lane-dense output store on the last step ----
    @pl.when(layer == pl.num_programs(0) - 1)
    def _finish():
        o_ref[...] = _ln(h, lnpost_g_ref, lnpost_b_ref).astype(o_ref.dtype)


# ------------------------------ parameters ---------------------------------
def init_params(key):
    def nrm(k, shape, std=0.02):
        return jax.random.normal(k, shape, dtype=DTYPE) * std

    k = jax.random.split(key, 7)
    D, L, M = WIDTH, LAYERS, MLP_HIDDEN
    return {
        # conv1 weight [width, C, P, P] stored pre-flattened as [C*P*P, width]
        'patch_w': nrm(k[0], (IN_CH * PATCH * PATCH, D)),        # conv1 has bias=False
        'class_emb': nrm(k[1], (D,)),
        'pos_emb': nrm(k[2], (SEQ, D)),
        'ln_pre_g': jnp.ones((1, D), DTYPE), 'ln_pre_b': jnp.zeros((1, D), DTYPE),
        'ln_post_g': jnp.ones((1, D), DTYPE), 'ln_post_b': jnp.zeros((1, D), DTYPE),
        # per-layer weights stacked along a leading L axis -> streamed by grid=(L,)
        'ln1_g': jnp.ones((L, 1, D), DTYPE), 'ln1_b': jnp.zeros((L, 1, D), DTYPE),
        'qkv_w': nrm(k[3], (L, D, 3 * D)),                        # in_proj (q;k;v stacked)
        'qkv_b': jnp.zeros((L, 1, 3 * D), DTYPE),
        'out_w': nrm(k[4], (L, D, D)),
        'out_b': jnp.zeros((L, 1, D), DTYPE),
        'ln2_g': jnp.ones((L, 1, D), DTYPE), 'ln2_b': jnp.zeros((L, 1, D), DTYPE),
        'fc1_w': nrm(k[5], (L, D, M)), 'fc1_b': jnp.zeros((L, 1, M), DTYPE),
        'fc2_w': nrm(k[6], (L, M, D)), 'fc2_b': jnp.zeros((L, 1, D), DTYPE),
    }


# ------------------------------ forward pass --------------------------------
def clip_vision_forward(params, x):
    """x: [B, C, H, W] (NCHW, like the PyTorch module). Returns [B, S, WIDTH]."""
    B, C, Himg, Wimg = x.shape
    gh, gw = Himg // PATCH, Wimg // PATCH
    N = gh * gw
    S = N + 1
    D = WIDTH
    M = MLP_HIDDEN
    CPP = C * PATCH * PATCH
    BS = B * S
    L = LAYERS

    # conv1 with kernel=stride=PATCH, no bias == patchify + matmul (matmul runs
    # in-kernel).  A zero "patch" row is prepended per image for the CLS slot so
    # the kernel builds the whole [B*S, D] token slab with a single MXU matmul.
    patches = x.reshape(B, C, gh, PATCH, gw, PATCH).transpose(0, 2, 4, 1, 3, 5)
    patches = patches.reshape(B, N, CPP)
    patches = jnp.concatenate(
        [jnp.zeros((B, 1, CPP), patches.dtype), patches], axis=1).reshape(BS, CPP)

    # class + positional embedding, pre-combined per token and tiled over batch
    emb = jnp.concatenate(
        [(params['class_emb'] + params['pos_emb'][0])[None, :],
         params['pos_emb'][1:]], axis=0)                         # [S, D]
    emb = jnp.tile(emb, (B, 1))                                  # [B*S, D]

    # block-diagonal additive bias: tokens only attend within their own image
    tok_b = jnp.arange(BS, dtype=jnp.int32) // S
    attn_bias = jnp.where(tok_b[:, None] == tok_b[None, :], 0.0, -1e30).astype(DTYPE)

    full = lambda shape: pl.BlockSpec(shape, lambda l: (0,) * len(shape))
    per_layer = lambda shape: pl.BlockSpec((None,) + shape, lambda l: (l, 0, 0))

    out = pl.pallas_call(
        functools.partial(_fused_vit_kernel, heads=HEADS, eps=LN_EPS),
        out_shape=jax.ShapeDtypeStruct((BS, D), DTYPE),
        grid=(L,),
        in_specs=[
            full((BS, CPP)),                     # patches (zero row at CLS slots)
            full((CPP, D)),                      # patch_w
            full((BS, D)),                       # class+pos embedding slab
            full((BS, BS)),                      # block-diagonal attention bias
            full((1, D)), full((1, D)),          # ln_pre g/b
            full((1, D)), full((1, D)),          # ln_post g/b
            per_layer((1, D)), per_layer((1, D)),          # ln1 g/b
            per_layer((D, 3 * D)), per_layer((1, 3 * D)),  # qkv w/b
            per_layer((D, D)), per_layer((1, D)),          # out proj w/b
            per_layer((1, D)), per_layer((1, D)),          # ln2 g/b
            per_layer((D, M)), per_layer((1, M)),          # fc1 w/b
            per_layer((M, D)), per_layer((1, D)),          # fc2 w/b
        ],
        out_specs=pl.BlockSpec((BS, D), lambda l: (0, 0)),
        scratch_shapes=[pltpu.VMEM((BS, D), jnp.float32)],   # residual stream h
        compiler_params=pltpu.CompilerParams(
            dimension_semantics=("arbitrary",)),
    )(patches, params['patch_w'], emb, attn_bias,
      params['ln_pre_g'], params['ln_pre_b'],
      params['ln_post_g'], params['ln_post_b'],
      params['ln1_g'], params['ln1_b'], params['qkv_w'], params['qkv_b'],
      params['out_w'], params['out_b'], params['ln2_g'], params['ln2_b'],
      params['fc1_w'], params['fc1_b'], params['fc2_w'], params['fc2_b'])

    return out.reshape(B, S, D)


# --------------------------------- main -------------------------------------
if __name__ == "__main__":
    key = jax.random.PRNGKey(0)
    pkey, xkey = jax.random.split(key)
    params = init_params(pkey)
    x = jax.random.normal(xkey, (BATCH, IN_CH, IMAGE_SIZE, IMAGE_SIZE), dtype=DTYPE)

    fwd = jax.jit(clip_vision_forward)
    out = fwd(params, x)
    jax.block_until_ready(out)

    assert out.shape == (BATCH, SEQ, WIDTH), out.shape
    assert out.dtype == DTYPE
    print("KERNEL_OK")
</pallas_src>

<mosaic_0001>
module attributes {stable_mosaic.version = 11 : i64} {
  func.func @_fused_vit_kernel(%arg0: i32, %arg1: memref<10x192xf32, #tpu.memory_space<vmem>>, %arg2: memref<192x32xf32, #tpu.memory_space<vmem>>, %arg3: memref<10x32xf32, #tpu.memory_space<vmem>>, %arg4: memref<10x10xf32, #tpu.memory_space<vmem>>, %arg5: memref<1x32xf32, #tpu.memory_space<vmem>>, %arg6: memref<1x32xf32, #tpu.memory_space<vmem>>, %arg7: memref<1x32xf32, #tpu.memory_space<vmem>>, %arg8: memref<1x32xf32, #tpu.memory_space<vmem>>, %arg9: memref<1x1x32xf32, #tpu.memory_space<vmem>>, %arg10: memref<1x1x32xf32, #tpu.memory_space<vmem>>, %arg11: memref<1x32x96xf32, #tpu.memory_space<vmem>>, %arg12: memref<1x1x96xf32, #tpu.memory_space<vmem>>, %arg13: memref<1x32x32xf32, #tpu.memory_space<vmem>>, %arg14: memref<1x1x32xf32, #tpu.memory_space<vmem>>, %arg15: memref<1x1x32xf32, #tpu.memory_space<vmem>>, %arg16: memref<1x1x32xf32, #tpu.memory_space<vmem>>, %arg17: memref<1x32x128xf32, #tpu.memory_space<vmem>>, %arg18: memref<1x1x128xf32, #tpu.memory_space<vmem>>, %arg19: memref<1x128x32xf32, #tpu.memory_space<vmem>>, %arg20: memref<1x1x32xf32, #tpu.memory_space<vmem>>, %arg21: memref<10x32xf32, #tpu.memory_space<vmem>>, %arg22: memref<10x32xf32, #tpu.memory_space<vmem>>) attributes {dimension_semantics = [#tpu.dimension_semantics<arbitrary>], iteration_bounds = array<i64: 2>, scalar_prefetch = 0 : i64, scratch_operands = 1 : i64, tpu.core_type = #tpu.core_type<tc>, window_params = [{pipeline_mode = #tpu.pipeline_mode<synchronous>, transform_indices = @transform_0, window_bounds = array<i64: 10, 192>}, {pipeline_mode = #tpu.pipeline_mode<synchronous>, transform_indices = @transform_1, window_bounds = array<i64: 192, 32>}, {pipeline_mode = #tpu.pipeline_mode<synchronous>, transform_indices = @transform_2, window_bounds = array<i64: 10, 32>}, {pipeline_mode = #tpu.pipeline_mode<synchronous>, transform_indices = @transform_3, window_bounds = array<i64: 10, 10>}, {pipeline_mode = #tpu.pipeline_mode<synchronous>, transform_indices = @transform_4, window_bounds = array<i64: 1, 32>}, {pipeline_mode = #tpu.pipeline_mode<synchronous>, transform_indices = @transform_5, window_bounds = array<i64: 1, 32>}, {pipeline_mode = #tpu.pipeline_mode<synchronous>, transform_indices = @transform_6, window_bounds = array<i64: 1, 32>}, {pipeline_mode = #tpu.pipeline_mode<synchronous>, transform_indices = @transform_7, window_bounds = array<i64: 1, 32>}, {transform_indices = @transform_8, window_bounds = array<i64: 1, 1, 32>}, {transform_indices = @transform_9, window_bounds = array<i64: 1, 1, 32>}, {transform_indices = @transform_10, window_bounds = array<i64: 1, 32, 96>}, {transform_indices = @transform_11, window_bounds = array<i64: 1, 1, 96>}, {transform_indices = @transform_12, window_bounds = array<i64: 1, 32, 32>}, {transform_indices = @transform_13, window_bounds = array<i64: 1, 1, 32>}, {transform_indices = @transform_14, window_bounds = array<i64: 1, 1, 32>}, {transform_indices = @transform_15, window_bounds = array<i64: 1, 1, 32>}, {transform_indices = @transform_16, window_bounds = array<i64: 1, 32, 128>}, {transform_indices = @transform_17, window_bounds = array<i64: 1, 1, 128>}, {transform_indices = @transform_18, window_bounds = array<i64: 1, 128, 32>}, {transform_indices = @transform_19, window_bounds = array<i64: 1, 1, 32>}, {pipeline_mode = #tpu.pipeline_mode<synchronous>, transform_indices = @transform_20, window_bounds = array<i64: 10, 32>}]} {
    %c0_i32 = arith.constant 0 : i32
    %0 = arith.cmpi eq, %arg0, %c0_i32 : i32
    %1 = arith.extui %0 : i1 to i32
    %c0_i32_0 = arith.constant 0 : i32
    %2 = arith.cmpi ne, %1, %c0_i32_0 : i32
    scf.if %2 {
      %c0_79 = arith.constant 0 : index
      %c0_80 = arith.constant 0 : index
      %176 = vector.load %arg1[%c0_79, %c0_80] : memref<10x192xf32, #tpu.memory_space<vmem>>, vector<10x192xf32>
      %c0_81 = arith.constant 0 : index
      %c0_82 = arith.constant 0 : index
      %177 = vector.load %arg2[%c0_81, %c0_82] : memref<192x32xf32, #tpu.memory_space<vmem>>, vector<192x32xf32>
      %cst_83 = arith.constant dense<0.000000e+00> : vector<10x32xf32>
      %178 = tpu.matmul %176, %177, %cst_83 {dimension_numbers = #tpu.dot_dimension_numbers<[1], [0], [0], [1], [0, 0, 1, 1], [], []>} : vector<10x192xf32>, vector<192x32xf32>, vector<10x32xf32> -> vector<10x32xf32>
      %c0_84 = arith.constant 0 : index
      %c0_85 = arith.constant 0 : index
      %179 = vector.load %arg3[%c0_84, %c0_85] : memref<10x32xf32, #tpu.memory_space<vmem>>, vector<10x32xf32>
      %180 = arith.addf %178, %179 : vector<10x32xf32>
      %cst_86 = arith.constant dense<0.000000e+00> : vector<10xf32>
      %181 = vector.multi_reduction <add>, %180, %cst_86 [1] : vector<10x32xf32> to vector<10xf32>
      %182 = vector.shape_cast %181 : vector<10xf32> to vector<10x1xf32>
      %cst_87 = arith.constant 3.200000e+01 : f32
      %183 = vector.broadcast %cst_87 : f32 to vector<10x1xf32>
      %184 = arith.divf %182, %183 : vector<10x1xf32>
      %185 = vector.broadcast %184 : vector<10x1xf32> to vector<10x32xf32>
      %186 = arith.subf %180, %185 : vector<10x32xf32>
      %187 = arith.mulf %186, %186 : vector<10x32xf32>
      %cst_88 = arith.constant dense<0.000000e+00> : vector<10xf32>
      %188 = vector.multi_reduction <add>, %187, %cst_88 [1] : vector<10x32xf32> to vector<10xf32>
      %189 = vector.shape_cast %188 : vector<10xf32> to vector<10x1xf32>
      %cst_89 = arith.constant 3.200000e+01 : f32
      %190 = vector.broadcast %cst_89 : f32 to vector<10x1xf32>
      %191 = arith.divf %189, %190 : vector<10x1xf32>
      %cst_90 = arith.constant 9.99999974E-6 : f32
      %192 = vector.broadcast %cst_90 : f32 to vector<10x1xf32>
      %193 = arith.addf %191, %192 : vector<10x1xf32>
      %194 = math.rsqrt %193 : vector<10x1xf32>
      %195 = vector.broadcast %194 : vector<10x1xf32> to vector<10x32xf32>
      %196 = arith.mulf %186, %195 : vector<10x32xf32>
      %c0_91 = arith.constant 0 : index
      %c0_92 = arith.constant 0 : index
      %197 = vector.load %arg5[%c0_91, %c0_92] : memref<1x32xf32, #tpu.memory_space<vmem>>, vector<1x32xf32>
      %198 = vector.broadcast %197 : vector<1x32xf32> to vector<10x32xf32>
      %199 = arith.mulf %196, %198 : vector<10x32xf32>
      %c0_93 = arith.constant 0 : index
      %c0_94 = arith.constant 0 : index
      %200 = vector.load %arg6[%c0_93, %c0_94] : memref<1x32xf32, #tpu.memory_space<vmem>>, vector<1x32xf32>
      %201 = vector.broadcast %200 : vector<1x32xf32> to vector<10x32xf32>
      %202 = arith.addf %199, %201 : vector<10x32xf32>
      %c0_95 = arith.constant 0 : index
      %c0_96 = arith.constant 0 : index
      %203 = vector.load %arg22[%c0_95, %c0_96] : memref<10x32xf32, #tpu.memory_space<vmem>>, vector<10x32xf32>
      tpu.vector_store %arg22[%c0_95, %c0_96], %202 {strides = array<i32>} : memref<10x32xf32, #tpu.memory_space<vmem>>, vector<10x32xf32>,
    } else {
    }
    %c0 = arith.constant 0 : index
    %c0_1 = arith.constant 0 : index
    %3 = vector.load %arg22[%c0, %c0_1] : memref<10x32xf32, #tpu.memory_space<vmem>>, vector<10x32xf32>
    %cst = arith.constant dense<0.000000e+00> : vector<10xf32>
    %4 = vector.multi_reduction <add>, %3, %cst [1] : vector<10x32xf32> to vector<10xf32>
    %5 = vector.shape_cast %4 : vector<10xf32> to vector<10x1xf32>
    %cst_2 = arith.constant 3.200000e+01 : f32
    %6 = vector.broadcast %cst_2 : f32 to vector<10x1xf32>
    %7 = arith.divf %5, %6 : vector<10x1xf32>
    %8 = vector.broadcast %7 : vector<10x1xf32> to vector<10x32xf32>
    %9 = arith.subf %3, %8 : vector<10x32xf32>
    %10 = arith.mulf %9, %9 : vector<10x32xf32>
    %cst_3 = arith.constant dense<0.000000e+00> : vector<10xf32>
    %11 = vector.multi_reduction <add>, %10, %cst_3 [1] : vector<10x32xf32> to vector<10xf32>
    %12 = vector.shape_cast %11 : vector<10xf32> to vector<10x1xf32>
    %cst_4 = arith.constant 3.200000e+01 : f32
    %13 = vector.broadcast %cst_4 : f32 to vector<10x1xf32>
    %14 = arith.divf %12, %13 : vector<10x1xf32>
    %cst_5 = arith.constant 9.99999974E-6 : f32
    %15 = vector.broadcast %cst_5 : f32 to vector<10x1xf32>
    %16 = arith.addf %14, %15 : vector<10x1xf32>
    %17 = math.rsqrt %16 : vector<10x1xf32>
    %18 = vector.broadcast %17 : vector<10x1xf32> to vector<10x32xf32>
    %19 = arith.mulf %9, %18 : vector<10x32xf32>
    %c0_6 = arith.constant 0 : index
    %c0_7 = arith.constant 0 : index
    %c0_8 = arith.constant 0 : index
    %20 = vector.load %arg9[%c0_6, %c0_7, %c0_8] : memref<1x1x32xf32, #tpu.memory_space<vmem>>, vector<1x1x32xf32>
    %21 = vector.shape_cast %20 : vector<1x1x32xf32> to vector<1x32xf32>
    %22 = vector.broadcast %21 : vector<1x32xf32> to vector<10x32xf32>
    %23 = arith.mulf %19, %22 : vector<10x32xf32>
    %c0_9 = arith.constant 0 : index
    %c0_10 = arith.constant 0 : index
    %c0_11 = arith.constant 0 : index
    %24 = vector.load %arg10[%c0_9, %c0_10, %c0_11] : memref<1x1x32xf32, #tpu.memory_space<vmem>>, vector<1x1x32xf32>
    %25 = vector.shape_cast %24 : vector<1x1x32xf32> to vector<1x32xf32>
    %26 = vector.broadcast %25 : vector<1x32xf32> to vector<10x32xf32>
    %27 = arith.addf %23, %26 : vector<10x32xf32>
    %c0_12 = arith.constant 0 : index
    %c0_13 = arith.constant 0 : index
    %c0_14 = arith.constant 0 : index
    %28 = vector.load %arg11[%c0_12, %c0_13, %c0_14] : memref<1x32x96xf32, #tpu.memory_space<vmem>>, vector<1x32x96xf32>
    %29 = vector.shape_cast %28 : vector<1x32x96xf32> to vector<32x96xf32>
    %cst_15 = arith.constant dense<0.000000e+00> : vector<10x96xf32>
    %30 = tpu.matmul %27, %29, %cst_15 {dimension_numbers = #tpu.dot_dimension_numbers<[1], [0], [0], [1], [0, 0, 1, 1], [], []>} : vector<10x32xf32>, vector<32x96xf32>, vector<10x96xf32> -> vector<10x96xf32>
    %c0_16 = arith.constant 0 : index
    %c0_17 = arith.constant 0 : index
    %c0_18 = arith.constant 0 : index
    %31 = vector.load %arg12[%c0_16, %c0_17, %c0_18] : memref<1x1x96xf32, #tpu.memory_space<vmem>>, vector<1x1x96xf32>
    %32 = vector.shape_cast %31 : vector<1x1x96xf32> to vector<1x96xf32>
    %33 = vector.broadcast %32 : vector<1x96xf32> to vector<10x96xf32>
    %34 = arith.addf %30, %33 : vector<10x96xf32>
    %35 = vector.extract_strided_slice %34 {offsets = [0, 0], sizes = [10, 32], strides = [1, 1]} : vector<10x96xf32> to vector<10x32xf32>
    %cst_19 = arith.constant 0.353553385 : f32
    %36 = vector.broadcast %cst_19 : f32 to vector<10x32xf32>
    %37 = arith.mulf %35, %36 : vector<10x32xf32>
    %38 = vector.extract_strided_slice %34 {offsets = [0, 32], sizes = [10, 32], strides = [1, 1]} : vector<10x96xf32> to vector<10x32xf32>
    %39 = vector.extract_strided_slice %34 {offsets = [0, 64], sizes = [10, 32], strides = [1, 1]} : vector<10x96xf32> to vector<10x32xf32>
    %c0_20 = arith.constant 0 : index
    %c0_21 = arith.constant 0 : index
    %c0_22 = arith.constant 0 : index
    %40 = vector.load %arg13[%c0_20, %c0_21, %c0_22] : memref<1x32x32xf32, #tpu.memory_space<vmem>>, vector<1x32x32xf32>
    %41 = vector.shape_cast %40 : vector<1x32x32xf32> to vector<32x32xf32>
    %c0_23 = arith.constant 0 : index
    %c0_24 = arith.constant 0 : index
    %42 = vector.load %arg4[%c0_23, %c0_24] : memref<10x10xf32, #tpu.memory_space<vmem>>, vector<10x10xf32>
    %cst_25 = arith.constant 0.000000e+00 : f32
    %43 = vector.broadcast %cst_25 : f32 to vector<10x32xf32>
    %44 = vector.extract_strided_slice %37 {offsets = [0, 0], sizes = [10, 8], strides = [1, 1]} : vector<10x32xf32> to vector<10x8xf32>
    %45 = vector.extract_strided_slice %38 {offsets = [0, 0], sizes = [10, 8], strides = [1, 1]} : vector<10x32xf32> to vector<10x8xf32>
    %cst_26 = arith.constant dense<0.000000e+00> : vector<10x10xf32>
    %46 = tpu.matmul %44, %45, %cst_26 {dimension_numbers = #tpu.dot_dimension_numbers<[1], [1], [0], [0], [0, 0, 1, 0], [], []>} : vector<10x8xf32>, vector<10x8xf32>, vector<10x10xf32> -> vector<10x10xf32>
    %47 = arith.addf %46, %42 : vector<10x10xf32>
    %cst_27 = arith.constant dense<0xFF800000> : vector<10xf32>
    %48 = vector.multi_reduction <maximumf>, %47, %cst_27 [1] : vector<10x10xf32> to vector<10xf32>
    %49 = vector.shape_cast %48 : vector<10xf32> to vector<10x1xf32>
    %50 = vector.broadcast %49 : vector<10x1xf32> to vector<10x10xf32>
    %51 = arith.subf %47, %50 : vector<10x10xf32>
    %52 = math.exp %51 : vector<10x10xf32>
    %cst_28 = arith.constant dense<0.000000e+00> : vector<10xf32>
    %53 = vector.multi_reduction <add>, %52, %cst_28 [1] : vector<10x10xf32> to vector<10xf32>
    %54 = vector.shape_cast %53 : vector<10xf32> to vector<10x1xf32>
    %55 = tpu.reciprocal %54 {approx = true} : vector<10x1xf32> -> vector<10x1xf32>
    %56 = vector.broadcast %55 : vector<10x1xf32> to vector<10x10xf32>
    %57 = arith.mulf %52, %56 : vector<10x10xf32>
    %58 = vector.extract_strided_slice %39 {offsets = [0, 0], sizes = [10, 8], strides = [1, 1]} : vector<10x32xf32> to vector<10x8xf32>
    %cst_29 = arith.constant dense<0.000000e+00> : vector<10x8xf32>
    %59 = tpu.matmul %57, %58, %cst_29 {dimension_numbers = #tpu.dot_dimension_numbers<[1], [0], [0], [1], [0, 0, 1, 1], [], []>} : vector<10x10xf32>, vector<10x8xf32>, vector<10x8xf32> -> vector<10x8xf32>
    %60 = vector.extract_strided_slice %41 {offsets = [0, 0], sizes = [8, 32], strides = [1, 1]} : vector<32x32xf32> to vector<8x32xf32>
    %cst_30 = arith.constant dense<0.000000e+00> : vector<10x32xf32>
    %61 = tpu.matmul %59, %60, %cst_30 {dimension_numbers = #tpu.dot_dimension_numbers<[1], [0], [0], [1], [0, 0, 1, 1], [], []>} : vector<10x8xf32>, vector<8x32xf32>, vector<10x32xf32> -> vector<10x32xf32>
    %62 = arith.addf %43, %61 : vector<10x32xf32>
    %63 = vector.extract_strided_slice %37 {offsets = [0, 8], sizes = [10, 8], strides = [1, 1]} : vector<10x32xf32> to vector<10x8xf32>
    %64 = vector.extract_strided_slice %38 {offsets = [0, 8], sizes = [10, 8], strides = [1, 1]} : vector<10x32xf32> to vector<10x8xf32>
    %cst_31 = arith.constant dense<0.000000e+00> : vector<10x10xf32>
    %65 = tpu.matmul %63, %64, %cst_31 {dimension_numbers = #tpu.dot_dimension_numbers<[1], [1], [0], [0], [0, 0, 1, 0], [], []>} : vector<10x8xf32>, vector<10x8xf32>, vector<10x10xf32> -> vector<10x10xf32>
    %66 = arith.addf %65, %42 : vector<10x10xf32>
    %cst_32 = arith.constant dense<0xFF800000> : vector<10xf32>
    %67 = vector.multi_reduction <maximumf>, %66, %cst_32 [1] : vector<10x10xf32> to vector<10xf32>
    %68 = vector.shape_cast %67 : vector<10xf32> to vector<10x1xf32>
    %69 = vector.broadcast %68 : vector<10x1xf32> to vector<10x10xf32>
    %70 = arith.subf %66, %69 : vector<10x10xf32>
    %71 = math.exp %70 : vector<10x10xf32>
    %cst_33 = arith.constant dense<0.000000e+00> : vector<10xf32>
    %72 = vector.multi_reduction <add>, %71, %cst_33 [1] : vector<10x10xf32> to vector<10xf32>
    %73 = vector.shape_cast %72 : vector<10xf32> to vector<10x1xf32>
    %74 = tpu.reciprocal %73 {approx = true} : vector<10x1xf32> -> vector<10x1xf32>
    %75 = vector.broadcast %74 : vector<10x1xf32> to vector<10x10xf32>
    %76 = arith.mulf %71, %75 : vector<10x10xf32>
    %77 = vector.extract_strided_slice %39 {offsets = [0, 8], sizes = [10, 8], strides = [1, 1]} : vector<10x32xf32> to vector<10x8xf32>
    %cst_34 = arith.constant dense<0.000000e+00> : vector<10x8xf32>
    %78 = tpu.matmul %76, %77, %cst_34 {dimension_numbers = #tpu.dot_dimension_numbers<[1], [0], [0], [1], [0, 0, 1, 1], [], []>} : vector<10x10xf32>, vector<10x8xf32>, vector<10x8xf32> -> vector<10x8xf32>
    %79 = vector.extract_strided_slice %41 {offsets = [8, 0], sizes = [8, 32], strides = [1, 1]} : vector<32x32xf32> to vector<8x32xf32>
    %cst_35 = arith.constant dense<0.000000e+00> : vector<10x32xf32>
    %80 = tpu.matmul %78, %79, %cst_35 {dimension_numbers = #tpu.dot_dimension_numbers<[1], [0], [0], [1], [0, 0, 1, 1], [], []>} : vector<10x8xf32>, vector<8x32xf32>, vector<10x32xf32> -> vector<10x32xf32>
    %81 = arith.addf %62, %80 : vector<10x32xf32>
    %82 = vector.extract_strided_slice %37 {offsets = [0, 16], sizes = [10, 8], strides = [1, 1]} : vector<10x32xf32> to vector<10x8xf32>
    %83 = vector.extract_strided_slice %38 {offsets = [0, 16], sizes = [10, 8], strides = [1, 1]} : vector<10x32xf32> to vector<10x8xf32>
    %cst_36 = arith.constant dense<0.000000e+00> : vector<10x10xf32>
    %84 = tpu.matmul %82, %83, %cst_36 {dimension_numbers = #tpu.dot_dimension_numbers<[1], [1], [0], [0], [0, 0, 1, 0], [], []>} : vector<10x8xf32>, vector<10x8xf32>, vector<10x10xf32> -> vector<10x10xf32>
    %85 = arith.addf %84, %42 : vector<10x10xf32>
    %cst_37 = arith.constant dense<0xFF800000> : vector<10xf32>
    %86 = vector.multi_reduction <maximumf>, %85, %cst_37 [1] : vector<10x10xf32> to vector<10xf32>
    %87 = vector.shape_cast %86 : vector<10xf32> to vector<10x1xf32>
    %88 = vector.broadcast %87 : vector<10x1xf32> to vector<10x10xf32>
    %89 = arith.subf %85, %88 : vector<10x10xf32>
    %90 = math.exp %89 : vector<10x10xf32>
    %cst_38 = arith.constant dense<0.000000e+00> : vector<10xf32>
    %91 = vector.multi_reduction <add>, %90, %cst_38 [1] : vector<10x10xf32> to vector<10xf32>
    %92 = vector.shape_cast %91 : vector<10xf32> to vector<10x1xf32>
    %93 = tpu.reciprocal %92 {approx = true} : vector<10x1xf32> -> vector<10x1xf32>
    %94 = vector.broadcast %93 : vector<10x1xf32> to vector<10x10xf32>
    %95 = arith.mulf %90, %94 : vector<10x10xf32>
    %96 = vector.extract_strided_slice %39 {offsets = [0, 16], sizes = [10, 8], strides = [1, 1]} : vector<10x32xf32> to vector<10x8xf32>
    %cst_39 = arith.constant dense<0.000000e+00> : vector<10x8xf32>
    %97 = tpu.matmul %95, %96, %cst_39 {dimension_numbers = #tpu.dot_dimension_numbers<[1], [0], [0], [1], [0, 0, 1, 1], [], []>} : vector<10x10xf32>, vector<10x8xf32>, vector<10x8xf32> -> vector<10x8xf32>
    %98 = vector.extract_strided_slice %41 {offsets = [16, 0], sizes = [8, 32], strides = [1, 1]} : vector<32x32xf32> to vector<8x32xf32>
    %cst_40 = arith.constant dense<0.000000e+00> : vector<10x32xf32>
    %99 = tpu.matmul %97, %98, %cst_40 {dimension_numbers = #tpu.dot_dimension_numbers<[1], [0], [0], [1], [0, 0, 1, 1], [], []>} : vector<10x8xf32>, vector<8x32xf32>, vector<10x32xf32> -> vector<10x32xf32>
    %100 = arith.addf %81, %99 : vector<10x32xf32>
    %101 = vector.extract_strided_slice %37 {offsets = [0, 24], sizes = [10, 8], strides = [1, 1]} : vector<10x32xf32> to vector<10x8xf32>
    %102 = vector.extract_strided_slice %38 {offsets = [0, 24], sizes = [10, 8], strides = [1, 1]} : vector<10x32xf32> to vector<10x8xf32>
    %cst_41 = arith.constant dense<0.000000e+00> : vector<10x10xf32>
    %103 = tpu.matmul %101, %102, %cst_41 {dimension_numbers = #tpu.dot_dimension_numbers<[1], [1], [0], [0], [0, 0, 1, 0], [], []>} : vector<10x8xf32>, vector<10x8xf32>, vector<10x10xf32> -> vector<10x10xf32>
    %104 = arith.addf %103, %42 : vector<10x10xf32>
    %cst_42 = arith.constant dense<0xFF800000> : vector<10xf32>
    %105 = vector.multi_reduction <maximumf>, %104, %cst_42 [1] : vector<10x10xf32> to vector<10xf32>
    %106 = vector.shape_cast %105 : vector<10xf32> to vector<10x1xf32>
    %107 = vector.broadcast %106 : vector<10x1xf32> to vector<10x10xf32>
    %108 = arith.subf %104, %107 : vector<10x10xf32>
    %109 = math.exp %108 : vector<10x10xf32>
    %cst_43 = arith.constant dense<0.000000e+00> : vector<10xf32>
    %110 = vector.multi_reduction <add>, %109, %cst_43 [1] : vector<10x10xf32> to vector<10xf32>
    %111 = vector.shape_cast %110 : vector<10xf32> to vector<10x1xf32>
    %112 = tpu.reciprocal %111 {approx = true} : vector<10x1xf32> -> vector<10x1xf32>
    %113 = vector.broadcast %112 : vector<10x1xf32> to vector<10x10xf32>
    %114 = arith.mulf %109, %113 : vector<10x10xf32>
    %115 = vector.extract_strided_slice %39 {offsets = [0, 24], sizes = [10, 8], strides = [1, 1]} : vector<10x32xf32> to vector<10x8xf32>
    %cst_44 = arith.constant dense<0.000000e+00> : vector<10x8xf32>
    %116 = tpu.matmul %114, %115, %cst_44 {dimension_numbers = #tpu.dot_dimension_numbers<[1], [0], [0], [1], [0, 0, 1, 1], [], []>} : vector<10x10xf32>, vector<10x8xf32>, vector<10x8xf32> -> vector<10x8xf32>
    %117 = vector.extract_strided_slice %41 {offsets = [24, 0], sizes = [8, 32], strides = [1, 1]} : vector<32x32xf32> to vector<8x32xf32>
    %cst_45 = arith.constant dense<0.000000e+00> : vector<10x32xf32>
    %118 = tpu.matmul %116, %117, %cst_45 {dimension_numbers = #tpu.dot_dimension_numbers<[1], [0], [0], [1], [0, 0, 1, 1], [], []>} : vector<10x8xf32>, vector<8x32xf32>, vector<10x32xf32> -> vector<10x32xf32>
    %119 = arith.addf %100, %118 : vector<10x32xf32>
    %120 = arith.addf %3, %119 : vector<10x32xf32>
    %c0_46 = arith.constant 0 : index
    %c0_47 = arith.constant 0 : index
    %c0_48 = arith.constant 0 : index
    %121 = vector.load %arg14[%c0_46, %c0_47, %c0_48] : memref<1x1x32xf32, #tpu.memory_space<vmem>>, vector<1x1x32xf32>
    %122 = vector.shape_cast %121 : vector<1x1x32xf32> to vector<1x32xf32>
    %123 = vector.broadcast %122 : vector<1x32xf32> to vector<10x32xf32>
    %124 = arith.addf %120, %123 : vector<10x32xf32>
    %cst_49 = arith.constant dense<0.000000e+00> : vector<10xf32>
    %125 = vector.multi_reduction <add>, %124, %cst_49 [1] : vector<10x32xf32> to vector<10xf32>
    %126 = vector.shape_cast %125 : vector<10xf32> to vector<10x1xf32>
    %cst_50 = arith.constant 3.200000e+01 : f32
    %127 = vector.broadcast %cst_50 : f32 to vector<10x1xf32>
    %128 = arith.divf %126, %127 : vector<10x1xf32>
    %129 = vector.broadcast %128 : vector<10x1xf32> to vector<10x32xf32>
    %130 = arith.subf %124, %129 : vector<10x32xf32>
    %131 = arith.mulf %130, %130 : vector<10x32xf32>
    %cst_51 = arith.constant dense<0.000000e+00> : vector<10xf32>
    %132 = vector.multi_reduction <add>, %131, %cst_51 [1] : vector<10x32xf32> to vector<10xf32>
    %133 = vector.shape_cast %132 : vector<10xf32> to vector<10x1xf32>
    %cst_52 = arith.constant 3.200000e+01 : f32
    %134 = vector.broadcast %cst_52 : f32 to vector<10x1xf32>
    %135 = arith.divf %133, %134 : vector<10x1xf32>
    %cst_53 = arith.constant 9.99999974E-6 : f32
    %136 = vector.broadcast %cst_53 : f32 to vector<10x1xf32>
    %137 = arith.addf %135, %136 : vector<10x1xf32>
    %138 = math.rsqrt %137 : vector<10x1xf32>
    %139 = vector.broadcast %138 : vector<10x1xf32> to vector<10x32xf32>
    %140 = arith.mulf %130, %139 : vector<10x32xf32>
    %c0_54 = arith.constant 0 : index
    %c0_55 = arith.constant 0 : index
    %c0_56 = arith.constant 0 : index
    %141 = vector.load %arg15[%c0_54, %c0_55, %c0_56] : memref<1x1x32xf32, #tpu.memory_space<vmem>>, vector<1x1x32xf32>
    %142 = vector.shape_cast %141 : vector<1x1x32xf32> to vector<1x32xf32>
    %143 = vector.broadcast %142 : vector<1x32xf32> to vector<10x32xf32>
    %144 = arith.mulf %140, %143 : vector<10x32xf32>
    %c0_57 = arith.constant 0 : index
    %c0_58 = arith.constant 0 : index
    %c0_59 = arith.constant 0 : index
    %145 = vector.load %arg16[%c0_57, %c0_58, %c0_59] : memref<1x1x32xf32, #tpu.memory_space<vmem>>, vector<1x1x32xf32>
    %146 = vector.shape_cast %145 : vector<1x1x32xf32> to vector<1x32xf32>
    %147 = vector.broadcast %146 : vector<1x32xf32> to vector<10x32xf32>
    %148 = arith.addf %144, %147 : vector<10x32xf32>
    %c0_60 = arith.constant 0 : index
    %c0_61 = arith.constant 0 : index
    %c0_62 = arith.constant 0 : index
    %149 = vector.load %arg17[%c0_60, %c0_61, %c0_62] : memref<1x32x128xf32, #tpu.memory_space<vmem>>, vector<1x32x128xf32>
    %150 = vector.shape_cast %149 : vector<1x32x128xf32> to vector<32x128xf32>
    %cst_63 = arith.constant dense<0.000000e+00> : vector<10x128xf32>
    %151 = tpu.matmul %148, %150, %cst_63 {dimension_numbers = #tpu.dot_dimension_numbers<[1], [0], [0], [1], [0, 0, 1, 1], [], []>} : vector<10x32xf32>, vector<32x128xf32>, vector<10x128xf32> -> vector<10x128xf32>
    %c0_64 = arith.constant 0 : index
    %c0_65 = arith.constant 0 : index
    %c0_66 = arith.constant 0 : index
    %152 = vector.load %arg18[%c0_64, %c0_65, %c0_66] : memref<1x1x128xf32, #tpu.memory_space<vmem>>, vector<1x1x128xf32>
    %153 = vector.shape_cast %152 : vector<1x1x128xf32> to vector<1x128xf32>
    %154 = vector.broadcast %153 : vector<1x128xf32> to vector<10x128xf32>
    %155 = arith.addf %151, %154 : vector<10x128xf32>
    %cst_67 = arith.constant 1.702000e+00 : f32
    %156 = vector.broadcast %cst_67 : f32 to vector<10x128xf32>
    %157 = arith.mulf %156, %155 : vector<10x128xf32>
    %158 = arith.negf %157 : vector<10x128xf32>
    %159 = math.exp %158 : vector<10x128xf32>
    %cst_68 = arith.constant 1.000000e+00 : f32
    %160 = vector.broadcast %cst_68 : f32 to vector<10x128xf32>
    %161 = arith.addf %160, %159 : vector<10x128xf32>
    %162 = arith.divf %160, %161 : vector<10x128xf32>
    %163 = arith.mulf %155, %162 : vector<10x128xf32>
    %c0_69 = arith.constant 0 : index
    %c0_70 = arith.constant 0 : index
    %c0_71 = arith.constant 0 : index
    %164 = vector.load %arg19[%c0_69, %c0_70, %c0_71] : memref<1x128x32xf32, #tpu.memory_space<vmem>>, vector<1x128x32xf32>
    %165 = vector.shape_cast %164 : vector<1x128x32xf32> to vector<128x32xf32>
    %cst_72 = arith.constant dense<0.000000e+00> : vector<10x32xf32>
    %166 = tpu.matmul %163, %165, %cst_72 {dimension_numbers = #tpu.dot_dimension_numbers<[1], [0], [0], [1], [0, 0, 1, 1], [], []>} : vector<10x128xf32>, vector<128x32xf32>, vector<10x32xf32> -> vector<10x32xf32>
    %167 = arith.addf %124, %166 : vector<10x32xf32>
    %c0_73 = arith.constant 0 : index
    %c0_74 = arith.constant 0 : index
    %c0_75 = arith.constant 0 : index
    %168 = vector.load %arg20[%c0_73, %c0_74, %c0_75] : memref<1x1x32xf32, #tpu.memory_space<vmem>>, vector<1x1x32xf32>
    %169 = vector.shape_cast %168 : vector<1x1x32xf32> to vector<1x32xf32>
    %170 = vector.broadcast %169 : vector<1x32xf32> to vector<10x32xf32>
    %171 = arith.addf %167, %170 : vector<10x32xf32>
    %c0_76 = arith.constant 0 : index
    %c0_77 = arith.constant 0 : index
    %172 = vector.load %arg22[%c0_76, %c0_77] : memref<10x32xf32, #tpu.memory_space<vmem>>, vector<10x32xf32>
    tpu.vector_store %arg22[%c0_76, %c0_77], %171 {strides = array<i32>} : memref<10x32xf32, #tpu.memory_space<vmem>>, vector<10x32xf32>,
    %c1_i32 = arith.constant 1 : i32
    %173 = arith.cmpi eq, %arg0, %c1_i32 : i32
    %174 = arith.extui %173 : i1 to i32
    %c0_i32_78 = arith.constant 0 : i32
    %175 = arith.cmpi ne, %174, %c0_i32_78 : i32
    scf.if %175 {
      %cst_79 = arith.constant dense<0.000000e+00> : vector<10xf32>
      %176 = vector.multi_reduction <add>, %171, %cst_79 [1] : vector<10x32xf32> to vector<10xf32>
      %177 = vector.shape_cast %176 : vector<10xf32> to vector<10x1xf32>
      %cst_80 = arith.constant 3.200000e+01 : f32
      %178 = vector.broadcast %cst_80 : f32 to vector<10x1xf32>
      %179 = arith.divf %177, %178 : vector<10x1xf32>
      %180 = vector.broadcast %179 : vector<10x1xf32> to vector<10x32xf32>
      %181 = arith.subf %171, %180 : vector<10x32xf32>
      %182 = arith.mulf %181, %181 : vector<10x32xf32>
      %cst_81 = arith.constant dense<0.000000e+00> : vector<10xf32>
      %183 = vector.multi_reduction <add>, %182, %cst_81 [1] : vector<10x32xf32> to vector<10xf32>
      %184 = vector.shape_cast %183 : vector<10xf32> to vector<10x1xf32>
      %cst_82 = arith.constant 3.200000e+01 : f32
      %185 = vector.broadcast %cst_82 : f32 to vector<10x1xf32>
      %186 = arith.divf %184, %185 : vector<10x1xf32>
      %cst_83 = arith.constant 9.99999974E-6 : f32
      %187 = vector.broadcast %cst_83 : f32 to vector<10x1xf32>
      %188 = arith.addf %186, %187 : vector<10x1xf32>
      %189 = math.rsqrt %188 : vector<10x1xf32>
      %190 = vector.broadcast %189 : vector<10x1xf32> to vector<10x32xf32>
      %191 = arith.mulf %181, %190 : vector<10x32xf32>
      %c0_84 = arith.constant 0 : index
      %c0_85 = arith.constant 0 : index
      %192 = vector.load %arg7[%c0_84, %c0_85] : memref<1x32xf32, #tpu.memory_space<vmem>>, vector<1x32xf32>
      %193 = vector.broadcast %192 : vector<1x32xf32> to vector<10x32xf32>
      %194 = arith.mulf %191, %193 : vector<10x32xf32>
      %c0_86 = arith.constant 0 : index
      %c0_87 = arith.constant 0 : index
      %195 = vector.load %arg8[%c0_86, %c0_87] : memref<1x32xf32, #tpu.memory_space<vmem>>, vector<1x32xf32>
      %196 = vector.broadcast %195 : vector<1x32xf32> to vector<10x32xf32>
      %197 = arith.addf %194, %196 : vector<10x32xf32>
      %c0_88 = arith.constant 0 : index
      %c0_89 = arith.constant 0 : index
      %198 = vector.load %arg21[%c0_88, %c0_89] : memref<10x32xf32, #tpu.memory_space<vmem>>, vector<10x32xf32>
      tpu.vector_store %arg21[%c0_88, %c0_89], %197 {strides = array<i32>} : memref<10x32xf32, #tpu.memory_space<vmem>>, vector<10x32xf32>,
    } else {
    }
    return
  }
  func.func @transform_0(%arg0: i32) -> (i32, i32) {
    %c0_i32 = arith.constant 0 : i32
    %c0_i32_0 = arith.constant 0 : i32
    %c0_i32_1 = arith.constant 0 : i32
    return %c0_i32, %c0_i32_0 : i32, i32
  }
  func.func @transform_1(%arg0: i32) -> (i32, i32) {
    %c0_i32 = arith.constant 0 : i32
    %c0_i32_0 = arith.constant 0 : i32
    %c0_i32_1 = arith.constant 0 : i32
    return %c0_i32, %c0_i32_0 : i32, i32
  }
  func.func @transform_2(%arg0: i32) -> (i32, i32) {
    %c0_i32 = arith.constant 0 : i32
    %c0_i32_0 = arith.constant 0 : i32
    %c0_i32_1 = arith.constant 0 : i32
    return %c0_i32, %c0_i32_0 : i32, i32
  }
  func.func @transform_3(%arg0: i32) -> (i32, i32) {
    %c0_i32 = arith.constant 0 : i32
    %c0_i32_0 = arith.constant 0 : i32
    %c0_i32_1 = arith.constant 0 : i32
    return %c0_i32, %c0_i32_0 : i32, i32
  }
  func.func @transform_4(%arg0: i32) -> (i32, i32) {
    %c0_i32 = arith.constant 0 : i32
    %c0_i32_0 = arith.constant 0 : i32
    %c0_i32_1 = arith.constant 0 : i32
    return %c0_i32, %c0_i32_0 : i32, i32
  }
  func.func @transform_5(%arg0: i32) -> (i32, i32) {
    %c0_i32 = arith.constant 0 : i32
    %c0_i32_0 = arith.constant 0 : i32
    %c0_i32_1 = arith.constant 0 : i32
    return %c0_i32, %c0_i32_0 : i32, i32
  }
  func.func @transform_6(%arg0: i32) -> (i32, i32) {
    %c0_i32 = arith.constant 0 : i32
    %c0_i32_0 = arith.constant 0 : i32
    %c0_i32_1 = arith.constant 0 : i32
    return %c0_i32, %c0_i32_0 : i32, i32
  }
  func.func @transform_7(%arg0: i32) -> (i32, i32) {
    %c0_i32 = arith.constant 0 : i32
    %c0_i32_0 = arith.constant 0 : i32
    %c0_i32_1 = arith.constant 0 : i32
    return %c0_i32, %c0_i32_0 : i32, i32
  }
  func.func @transform_8(%arg0: i32) -> (i32, i32, i32) {
    %c0_i32 = arith.constant 0 : i32
    %c0_i32_0 = arith.constant 0 : i32
    %c0_i32_1 = arith.constant 0 : i32
    return %arg0, %c0_i32, %c0_i32_0 : i32, i32, i32
  }
  func.func @transform_9(%arg0: i32) -> (i32, i32, i32) {
    %c0_i32 = arith.constant 0 : i32
    %c0_i32_0 = arith.constant 0 : i32
    %c0_i32_1 = arith.constant 0 : i32
    return %arg0, %c0_i32, %c0_i32_0 : i32, i32, i32
  }
  func.func @transform_10(%arg0: i32) -> (i32, i32, i32) {
    %c0_i32 = arith.constant 0 : i32
    %c0_i32_0 = arith.constant 0 : i32
    %c0_i32_1 = arith.constant 0 : i32
    return %arg0, %c0_i32, %c0_i32_0 : i32, i32, i32
  }
  func.func @transform_11(%arg0: i32) -> (i32, i32, i32) {
    %c0_i32 = arith.constant 0 : i32
    %c0_i32_0 = arith.constant 0 : i32
    %c0_i32_1 = arith.constant 0 : i32
    return %arg0, %c0_i32, %c0_i32_0 : i32, i32, i32
  }
  func.func @transform_12(%arg0: i32) -> (i32, i32, i32) {
    %c0_i32 = arith.constant 0 : i32
    %c0_i32_0 = arith.constant 0 : i32
    %c0_i32_1 = arith.constant 0 : i32
    return %arg0, %c0_i32, %c0_i32_0 : i32, i32, i32
  }
  func.func @transform_13(%arg0: i32) -> (i32, i32, i32) {
    %c0_i32 = arith.constant 0 : i32
    %c0_i32_0 = arith.constant 0 : i32
    %c0_i32_1 = arith.constant 0 : i32
    return %arg0, %c0_i32, %c0_i32_0 : i32, i32, i32
  }
  func.func @transform_14(%arg0: i32) -> (i32, i32, i32) {
    %c0_i32 = arith.constant 0 : i32
    %c0_i32_0 = arith.constant 0 : i32
    %c0_i32_1 = arith.constant 0 : i32
    return %arg0, %c0_i32, %c0_i32_0 : i32, i32, i32
  }
  func.func @transform_15(%arg0: i32) -> (i32, i32, i32) {
    %c0_i32 = arith.constant 0 : i32
    %c0_i32_0 = arith.constant 0 : i32
    %c0_i32_1 = arith.constant 0 : i32
    return %arg0, %c0_i32, %c0_i32_0 : i32, i32, i32
  }
  func.func @transform_16(%arg0: i32) -> (i32, i32, i32) {
    %c0_i32 = arith.constant 0 : i32
    %c0_i32_0 = arith.constant 0 : i32
    %c0_i32_1 = arith.constant 0 : i32
    return %arg0, %c0_i32, %c0_i32_0 : i32, i32, i32
  }
  func.func @transform_17(%arg0: i32) -> (i32, i32, i32) {
    %c0_i32 = arith.constant 0 : i32
    %c0_i32_0 = arith.constant 0 : i32
    %c0_i32_1 = arith.constant 0 : i32
    return %arg0, %c0_i32, %c0_i32_0 : i32, i32, i32
  }
  func.func @transform_18(%arg0: i32) -> (i32, i32, i32) {
    %c0_i32 = arith.constant 0 : i32
    %c0_i32_0 = arith.constant 0 : i32
    %c0_i32_1 = arith.constant 0 : i32
    return %arg0, %c0_i32, %c0_i32_0 : i32, i32, i32
  }
  func.func @transform_19(%arg0: i32) -> (i32, i32, i32) {
    %c0_i32 = arith.constant 0 : i32
    %c0_i32_0 = arith.constant 0 : i32
    %c0_i32_1 = arith.constant 0 : i32
    return %arg0, %c0_i32, %c0_i32_0 : i32, i32, i32
  }
  func.func @transform_20(%arg0: i32) -> (i32, i32) {
    %c0_i32 = arith.constant 0 : i32
    %c0_i32_0 = arith.constant 0 : i32
    %c0_i32_1 = arith.constant 0 : i32
    return %c0_i32, %c0_i32_0 : i32, i32
  }
}

</mosaic_0001>

<bundles_post_ra>
// kernel: tile.9
= control target key start
LH: loop header
LB: loop body
LE: loop exit
PB: predicated region body
PF: predicated region fallthrough
CT: control target
= control target key end

     0   :  { %vm3_vm0 = vcmask 261120   ;;  %s34_s0 = inlined_call_operand.vmem [shape: f32[2,5,32], index: 0, kind: input, shape index: {}]   ;;  %s35_s1 = inlined_call_operand.vmem [shape: f32[10,32], index: 1, kind: output, shape index: {}]  }
   0x1   :  { %v2_v0 = vld [vmem:[%s34_s0] sm:$0x1f]   ;;  %v10_v1 = vld [vmem:[%s34_s0 + $0x8] sm:$0x1f]  }
   0x2   :  { %4 = vst.msk [vmem:[%s35_s1] sm:$0x1f] %vm3_vm0, %v2_v0   ;;  %11 = vst.msk [vmem:[%s35_s1 + $0x5] sm:$0x1f] %vm3_vm0, %v10_v1  }

// kernel: clip_vision_forward.1
= control target key start
LH: loop header
LB: loop body
LE: loop exit
PB: predicated region body
PF: predicated region fallthrough
CT: control target
= control target key end

     0   :  { %s3825_s0 = inlined_call_operand.vmem [shape: f32[10,192], index: 0, kind: input, shape index: {}]   ;;  %s3826_s1 = inlined_call_operand.vmem [shape: f32[192,32], index: 1, kind: input, shape index: {}]   ;;  %s3827_s2 = inlined_call_operand.vmem [shape: f32[10,32], index: 2, kind: input, shape index: {}]   ;;  %s3828_s3 = inlined_call_operand.vmem [shape: f32[10,10], index: 3, kind: input, shape index: {}]   ;;  %s3829_s4 = inlined_call_operand.vmem [shape: f32[1,32], index: 4, kind: input, shape index: {}]   ;;  %s3830_s5 = inlined_call_operand.vmem [shape: f32[1,32], index: 5, kind: input, shape index: {}]   ;;  %s3831_s6 = inlined_call_operand.vmem [shape: f32[1,32], index: 6, kind: input, shape index: {}]   ;;  %s3832_s7 = inlined_call_operand.vmem [shape: f32[1,32], index: 7, kind: input, shape index: {}]   ;;  %s3833_s8 = inlined_call_operand.vmem [shape: f32[2,1,32], index: 8, kind: input, shape index: {}]   ;;  %s3834_s9 = inlined_call_operand.vmem [shape: f32[2,1,32], index: 9, kind: input, shape index: {}]   ;;  %s3835_s10 = inlined_call_operand.vmem [shape: f32[2,32,96], index: 10, kind: input, shape index: {}]   ;;  %s3836_s11 = inlined_call_operand.vmem [shape: f32[2,1,96], index: 11, kind: input, shape index: {}]   ;;  %s3837_s12 = inlined_call_operand.vmem [shape: f32[2,32,32], index: 12, kind: input, shape index: {}]   ;;  %s3838_s13 = inlined_call_operand.vmem [shape: f32[2,1,32], index: 13, kind: input, shape index: {}]   ;;  %s3839_s14 = inlined_call_operand.vmem [shape: f32[2,1,32], index: 14, kind: input, shape index: {}]   ;;  %s3840_s15 = inlined_call_operand.vmem [shape: f32[2,1,32], index: 15, kind: input, shape index: {}]   ;;  %s3841_s16 = inlined_call_operand.vmem [shape: f32[2,32,128], index: 16, kind: input, shape index: {}]   ;;  %s3842_s17 = inlined_call_operand.vmem [shape: f32[2,1,128], index: 17, kind: input, shape index: {}]   ;;  %s3843_s18 = inlined_call_operand.vmem [shape: f32[2,128,32], index: 18, kind: input, shape index: {}]   ;;  %s3844_s19 = inlined_call_operand.vmem [shape: f32[2,1,32], index: 19, kind: input, shape index: {}]   ;;  %s3845_s20 = inlined_call_operand.vmem [shape: f32[10,32], index: 20, kind: output, shape index: {}]  }
   0x1   :  { %3853 = sst [smem:[#allocation5_spill]] %s3825_s0 }
   0x2   :  { %3854 = sst [smem:[#allocation6_spill]] %s3826_s1  ;;  %s3378_s1 = smov 0  }
   0x3   :  { %3855 = sst [smem:[#allocation7_spill]] %s3827_s2 }
   0x4   :  { %3856 = sst [smem:[#allocation8_spill]] %s3828_s3 }
   0x5   :  { %3857 = sst [smem:[#allocation9_spill]] %s3829_s4 }
   0x6   :  { %3858 = sst [smem:[#allocation10_spill]] %s3831_s6 }
   0x7   :  { %3859 = sst [smem:[#allocation11_spill]] %s3832_s7 }
   0x8   :  { %3860 = sst [smem:[#allocation12_spill]] %s3835_s10 }
   0x9   :  { %3861 = sst [smem:[#allocation13_spill]] %s3837_s12 }
   0xa   :  { %3862 = sst [smem:[#allocation14_spill]] %s3845_s20 }
   0xb LB: > { %3863 = sst [smem:[#allocation3_spill]] %s3258_s1  ;;  %s3384_s22 = sadd.s32 4294967295, %s3258_s1   ;;  %s3258_s1 = sphi %s3378_s1, %s30_s1  }
   0xc   : > { %p2693_p0 = scmp.ge.s32.totalorder %s3258_s1, 1  ;;  %p651_p1 = scmp.lt.s32.totalorder %s3258_s1, 3 }
   0xe   : > { %p652_p2 = pnand %p2693_p0, %p651_p1 }
  0x10   : > { %655 = sbr.rel (%p652_p2) target bundleno = 4648 (0x1228), region = 100 }
  0x17   : > { %p743_p3 = scmp.lt.s32.totalorder %s3384_s22, 1  ;;  %s3864_s10 = sld [smem:[#allocation12_spill]] }
  0x18   : > { %s3865_s12 = sld [smem:[#allocation13_spill]]  ;;  %p2702_p4 = scmp.ne.s32.totalorder %s3384_s22, 0 }
  0x19   : > { %s3390_s23 = scalar_select %p743_p3, %s3384_s22, 1 }
  0x1a   : > { %790 = sbr.rel (%p2702_p4) target bundleno = 614 (0x266), region = 104  ;;  %s3867_s0 = sld [smem:[#allocation6_spill]] (!%p2702_p4)  ;;  %v3260_v3 = vmov (!%p2702_p4), 0.0|0.0   ;;  %vm821_vm0 = vcmask (!%p2702_p4), 523264   ;;  %vm903_vm1 = vcmask (!%p2702_p4), 261120   ;;  %vm907_vm2 = vcmask (!%p2702_p4), 254976  }
  0x1b   : > { %s2762_s28 = sshll.u32 %s3390_s23, 5  ;;  %s767_s6 = scalar_lea.vmem %s3839_s14, %s3390_s23  ;;  %2973 = vmatprep.subr.bf16.mxu0 (!%p2702_p4), %v3260_v3  ;;  %3105 = vmatprep.subr.bf16.mxu1 (!%p2702_p4), %v3260_v3 }
  0x1c   : > { %s770_s30 = scalar_lea.vmem %s3840_s15, %s3390_s23  ;;  %s786_s4 = scalar_lea.vmem %s3844_s19, %s3390_s23 }
  0x1d   : > { %s3408_s24 = scalar_lea.vmem %s3864_s10, %s2762_s28  ;;  %s3430_s10 = scalar_lea.vmem %s3841_s16, %s2762_s28 }
  0x1e   : > { %s3413_s20 = scalar_lea.vmem %s3865_s12, %s2762_s28  ;;  %s3868_s7 = sld [smem:[#allocation5_spill]] (!%p2702_p4) }
  0x1f   : > { %3866 = sst [smem:[#allocation4_spill]] %s3413_s20  ;;  %s2765_s20 = sshll.u32 %s3390_s23, 7 }
  0x20   : > { %s3440_s3 = scalar_lea.vmem %s3843_s18, %s2765_s20  ;;  %v795_v0 = vld [vmem:[%s3867_s0] sm:$0xff] (!%p2702_p4)  ;;  %v796_v1 = vld [vmem:[%s3867_s0 + $0x8] sm:$0xff] (!%p2702_p4)  ;;  %v797_v2 = vld [vmem:[%s3867_s0 + $0x10] sm:$0xff] (!%p2702_p4)  ;;  %s3869_s25 = sld [smem:[#allocation7_spill]] (!%p2702_p4) }
  0x21   : > { %v2974_v4 = vpack.c.bf16 %v796_v1, %v795_v0  ;;  %v798_v5 = vld [vmem:[%s3867_s0 + $0x18] sm:$0xff]  ;;  %v799_v7 = vld [vmem:[%s3867_s0 + $0x20] sm:$0xff]  ;;  %v800_v8 = vld [vmem:[%s3867_s0 + $0x28] sm:$0xff]  ;;  %s3870_s28 = sld [smem:[#allocation9_spill]] }
  0x22   : > { %v2977_v6 = vpack.c.bf16 %v798_v5, %v797_v2  ;;  %v2980_v9 = vpack.c.bf16 %v800_v8, %v799_v7  ;;  %v801_v10 = vld [vmem:[%s3867_s0 + $0x30] sm:$0xff]  ;;  %v802_v11 = vld [vmem:[%s3867_s0 + $0x38] sm:$0xff]  ;;  %v803_v15 = vld [vmem:[%s3867_s0 + $0x40] sm:$0xff] }
  0x23   : > { %2975 = vmatpush1.bf16.msra.mxu0 %v2974_v4  ;;  %3117 = vmatpush1.bf16.msra.mxu1 %v2974_v4  ;;  %v2983_v14 = vpack.c.bf16 %v802_v11, %v801_v10  ;;  %v804_v16 = vld [vmem:[%s3867_s0 + $0x48] sm:$0xff]  ;;  %v805_v18 = vld [vmem:[%s3867_s0 + $0x50] sm:$0xff]  ;;  %v806_v19 = vld [vmem:[%s3867_s0 + $0x58] sm:$0xff] }
  0x24   : > { %2976 = vmatprep.subr.bf16.mxu0 %v3260_v3  ;;  %3106 = vmatprep.subr.bf16.mxu1 %v3260_v3  ;;  %v792_v12 = vld [vmem:[%s3868_s7 + $0x8] sm:$0xff]  ;;  %v794_v13 = vld [vmem:[%s3868_s7 + $0x18] sm:$0x3]  ;;  %v2986_v17 = vpack.c.bf16 %v804_v16, %v803_v15  ;;  %v2989_v20 = vpack.c.bf16 %v806_v19, %v805_v18  ;;  %v807_v21 = vld [vmem:[%s3867_s0 + $0x60] sm:$0xff] }
  0x25   : > { %2703 = vmatprep.mubr.msk.f32.mxu0 %vm821_vm0, %v792_v12  ;;  %2704 = vmatprep.mubr.msk.f32.mxu1 %vm821_vm0, %v794_v13  ;;  %v808_v22 = vld [vmem:[%s3867_s0 + $0x68] sm:$0xff]  ;;  %v809_v24 = vld [vmem:[%s3867_s0 + $0x70] sm:$0xff]  ;;  %v810_v25 = vld [vmem:[%s3867_s0 + $0x78] sm:$0xff] }
  0x26   : > { %v2992_v23 = vpack.c.bf16 %v808_v22, %v807_v21  ;;  %v2995_v26 = vpack.c.bf16 %v810_v25, %v809_v24  ;;  %v811_v27 = vld [vmem:[%s3867_s0 + $0x80] sm:$0xff]  ;;  %v812_v28 = vld [vmem:[%s3867_s0 + $0x88] sm:$0xff]  ;;  %v813_v30 = vld [vmem:[%s3867_s0 + $0x90] sm:$0xff] }
  0x27   : > { %2978 = vmatpush1.bf16.msra.mxu0 %v2977_v6  ;;  %3118 = vmatpush1.bf16.msra.mxu1 %v2977_v6  ;;  %v2998_v29 = vpack.c.bf16 %v812_v28, %v811_v27  ;;  %v814_v31 = vld [vmem:[%s3867_s0 + $0x98] sm:$0xff]  ;;  %v815_v33 = vld [vmem:[%s3867_s0 + $0xa0] sm:$0xff]  ;;  %v816_v34 = vld [vmem:[%s3867_s0 + $0xa8] sm:$0xff] }
  0x28   : > { %2979 = vmatprep.subr.bf16.mxu0 %v3260_v3  ;;  %3107 = vmatprep.subr.bf16.mxu1 %v3260_v3  ;;  %v3001_v32 = vpack.c.bf16 %v814_v31, %v813_v30  ;;  %v3004_v35 = vpack.c.bf16 %v816_v34, %v815_v33  ;;  %v817_v36 = vld [vmem:[%s3867_s0 + $0xb0] sm:$0xff]  ;;  %v818_v37 = vld [vmem:[%s3867_s0 + $0xb8] sm:$0xff]  ;;  %v791_v39 = vld [vmem:[%s3868_s7] sm:$0xff] }
  0x29   : > { %v3007_v38 = vpack.c.bf16 %v818_v37, %v817_v36  ;;  %v793_v40 = vld [vmem:[%s3868_s7 + $0x10] sm:$0x3]  ;;  %v819_v41 = vld [vmem:[%s3869_s25] sm:$0xff]  ;;  %v820_v42 = vld [vmem:[%s3869_s25 + $0x8] sm:$0x3] }
  0x2a   : > { %v2705_v4 = vld [vmem:[%s3870_s28] ss:$0 sm:$0xff] }
  0x2b   : > { %2981 = vmatpush1.bf16.msra.mxu0 %v2980_v9  ;;  %3119 = vmatpush1.bf16.msra.mxu1 %v2980_v9  ;;  %v2706_v6 = vld [vmem:[%s3830_s5] ss:$0 sm:$0xff] }
  0x2c   : > { %2982 = vmatprep.subr.bf16.mxu0 %v3260_v3  ;;  %3108 = vmatprep.subr.bf16.mxu1 %v3260_v3 }
  0x2f   : > { %2984 = vmatpush1.bf16.msra.mxu0 %v2983_v14  ;;  %3120 = vmatpush1.bf16.msra.mxu1 %v2983_v14 }
  0x30   : > { %2985 = vmatprep.subr.bf16.mxu0 %v3260_v3  ;;  %3109 = vmatprep.subr.bf16.mxu1 %v3260_v3 }
  0x33   : > { %2987 = vmatpush1.bf16.msra.mxu0 %v2986_v17  ;;  %3121 = vmatpush1.bf16.msra.mxu1 %v2986_v17 }
  0x34   : > { %2988 = vmatprep.subr.bf16.mxu0 %v3260_v3  ;;  %3110 = vmatprep.subr.bf16.mxu1 %v3260_v3 }
  0x37   : > { %2990 = vmatpush1.bf16.msra.mxu0 %v2989_v20  ;;  %3122 = vmatpush1.bf16.msra.mxu1 %v2989_v20 }
  0x38   : > { %2991 = vmatprep.subr.bf16.mxu0 %v3260_v3  ;;  %3111 = vmatprep.subr.bf16.mxu1 %v3260_v3 }
  0x3b   : > { %2993 = vmatpush1.bf16.msra.mxu0 %v2992_v23  ;;  %3123 = vmatpush1.bf16.msra.mxu1 %v2992_v23 }
  0x3c   : > { %2994 = vmatprep.subr.bf16.mxu0 %v3260_v3  ;;  %3112 = vmatprep.subr.bf16.mxu1 %v3260_v3 }
  0x3f   : > { %2996 = vmatpush1.bf16.msra.mxu0 %v2995_v26  ;;  %3124 = vmatpush1.bf16.msra.mxu1 %v2995_v26 }
  0x40   : > { %2997 = vmatprep.subr.bf16.mxu0 %v3260_v3  ;;  %3113 = vmatprep.subr.bf16.mxu1 %v3260_v3 }
  0x43   : > { %2999 = vmatpush1.bf16.msra.mxu0 %v2998_v29  ;;  %3125 = vmatpush1.bf16.msra.mxu1 %v2998_v29 }
  0x44   : > { %3000 = vmatprep.subr.bf16.mxu0 %v3260_v3  ;;  %3114 = vmatprep.subr.bf16.mxu1 %v3260_v3 }
  0x47   : > { %3002 = vmatpush1.bf16.msra.mxu0 %v3001_v32  ;;  %3126 = vmatpush1.bf16.msra.mxu1 %v3001_v32 }
  0x48   : > { %3003 = vmatprep.subr.bf16.mxu0 %v3260_v3  ;;  %3115 = vmatprep.subr.bf16.mxu1 %v3260_v3 }
  0x4b   : > { %3005 = vmatpush1.bf16.msra.mxu0 %v3004_v35  ;;  %3127 = vmatpush1.bf16.msra.mxu1 %v3004_v35 }
  0x4c   : > { %3006 = vmatprep.subr.bf16.mxu0 %v3260_v3  ;;  %3116 = vmatprep.subr.bf16.mxu1 %v3260_v3 }
  0x4f   : > { %3008 = vmatpush1.bf16.msra.mxu0 %v3007_v38  ;;  %3128 = vmatpush1.bf16.msra.mxu1 %v3007_v38 }
  0x52   : > { %893 = vmatmul.mubr.f32.vlgmr.msra.gmra.mrb[0].mxu0 %v791_v39  ;;  %898 = vmatmul.mubr.f32.vlgmr.msra.gmra.mrb[0].mxu1 %v793_v40 }
 0x125   : > { %v894_v43 = vpop.f32.mrb[0].mxu0  ;;  %v899_v44 = vpop.f32.mrb[0].mxu1 }
 0x126   : > { %v895_v45 = vadd.f32 %v894_v43, %v819_v41  ;;  %v896_v46 = vpop.f32.mrb[1].mxu0  ;;  %v900_v47 = vadd.f32 %v899_v44, %v820_v42  ;;  %v901_v48 = vpop.f32.mrb[1].mxu1 }
 0x128   : > { %v904_v49 = vsel %vm903_vm1, %v895_v45, 0.0  ;;  %v908_v50 = vsel %vm907_vm2, %v900_v47, 0.0 }
 0x129   : > { %905 = vadd.xlane.f32.xlu0 %v904_v49 }
 0x12d   : > { %909 = vadd.xlane.f32.xlu0 %v908_v50 }
 0x1b6   : > { %v906_v51 = vpop.xlane.xlu0 %905 }
 0x1b7   : > { %v912_v52 = vmul.f32 0.03125, %v906_v51 }
 0x1b9   : > { %v914_v53 = vsub.f32 %v895_v45, %v912_v52 }
 0x1ba   : > { %v910_v54 = vpop.xlane.xlu0 %909 }
 0x1bb   : > { %v913_v55 = vmul.f32 0.03125, %v910_v54  ;;  %v916_v56 = vmul.f32 %v914_v53, %v914_v53 }
 0x1bd   : > { %v915_v57 = vsub.f32 %v900_v47, %v913_v55  ;;  %v918_v58 = vsel %vm903_vm1, %v916_v56, 0.0 }
 0x1be   : > { %919 = vadd.xlane.f32.xlu1 %v918_v58 }
 0x1bf   : > { %v917_v59 = vmul.f32 %v915_v57, %v915_v57 }
 0x1c1   : > { %v921_v60 = vsel %vm907_vm2, %v917_v59, 0.0 }
 0x1c2   : > { %922 = vadd.xlane.f32.xlu1 %v921_v60 }
 0x24b   : > { %v920_v61 = vpop.xlane.xlu1 %919 }
 0x24c   : > { %v924_v62 = vmul.f32 0.03125, %v920_v61 }
 0x24e   : > { %v926_v63 = vadd.f32 1e-05, %v924_v62 }
 0x24f   : > { %v923_v0 = vpop.xlane.xlu1 %922 }
 0x250   : > { %3156 = vrsqrt.f32 %v926_v63  ;;  %v925_v1 = vmul.f32 0.03125, %v923_v0 }
 0x252   : > { %v927_v2 = vadd.f32 1e-05, %v925_v1 }
 0x254   : > { %3158 = vrsqrt.f32 %v927_v2 }
 0x25a   : > { %v3157_v3 = vpop.eup %3156 }
 0x25b   : > { %v930_v5 = vmul.f32 %v3157_v3, %v914_v53 }
 0x25d   : > { %v939_v7 = vmul.f32 %v2705_v4, %v930_v5 }
 0x25e   : > { %v3159_v8 = vpop.eup %3158 }
 0x25f   : > { %v948_v9 = vadd.f32 %v2706_v6, %v939_v7  ;;  %v931_v10 = vmul.f32 %v3159_v8, %v915_v57 }
 0x261   : > { %950 = vst.msk [vmem:[#allocation2] sm:$0xff] %vm903_vm1, %v948_v9  ;;  %v940_v11 = vmul.f32 %v2705_v4, %v931_v10 }
 0x263   : > { %v949_v12 = vadd.f32 %v2706_v6, %v940_v11 }
 0x265   : > { %951 = vst.msk [vmem:[#allocation2 + $0x8] sm:$0x3] %vm907_vm2, %v949_v12 }
 0x266 PF: > { %vm954_vm3 = vcmask 261120   ;;  %vm958_vm4 = vcmask 254976   ;;  %v1001_v27 = vld [vmem:[%s3408_s24] sm:$0xff]  ;;  %v1002_v28 = vld [vmem:[%s3408_s24 + $0x8] sm:$0xff]  ;;  %v1003_v29 = vld [vmem:[%s3408_s24 + $0x10] sm:$0xff]  ;;  %s3872_s26 = scalar_lea.vmem %s3834_s9, %s3390_s23  ;;  %s3873_s21 = scalar_lea.vmem %s3836_s11, %s3390_s23  ;;  %vm1107_vm5 = vcmask 64512  }
 0x267   : > { %v3009_v30 = vpack.c.bf16 %v1002_v28, %v1001_v27  ;;  %v1004_v31 = vld [vmem:[%s3408_s24 + $0x18] sm:$0xff]  ;;  %s3871_s24 = scalar_lea.vmem %s3833_s8, %s3390_s23  ;;  %v2708_v42 = vld [vmem:[%s3872_s26] ss:$0 sm:$0xff]  ;;  %s3261_s1 = smov 96   ;;  %vm3620_vm6 = vmpackc.low %vm1107_vm5, %vm1107_vm5  ;;  %vm1193_vm7 = vcmask 80896   ;;  %vm1197_vm8 = vcmask 74752  }
 0x268   : > { %v3573_v13 = vld [vmem:[#allocation2] sm:$0xff]  ;;  %v3013_v32 = vpack.c.bf16 %v1004_v31, %v1003_v29  ;;  %s3262_s2 = smov 88   ;;  %s3263_s20 = smov 120   ;;  %vm1228_vm9 = vcmask 1041408   ;;  %vm3265_vm10 = vmmov 1  }
 0x269   : > { %v955_v15 = vsel %vm954_vm3, %v3573_v13, 0.0  ;;  %3010 = vmatprep.subr.bf16.mxu1 %v3009_v30  ;;  %v2707_v40 = vld [vmem:[%s3871_s24] ss:$0 sm:$0xff]  ;;  %s3876_s27 = sld [smem:[#allocation8_spill]]  ;;  %s3264_s28 = smov 64   ;;  %vm3647_vm11 = vmpackc.low %vm1228_vm9, %vm3265_vm10 }
 0x26a   : > { %956 = vadd.xlane.f32.xlu0 %v955_v15  ;;  %3012 = vmatpush3.bf16.msra.mxu1 %v3009_v30  ;;  %v2709_v49 = vld [vmem:[%s3873_s21] ss:$0 sm:$0xff]  ;;  %s3266_s21 = smov 56   ;;  %s3270_s24 = smov 80  }
 0x26b   : > { %3014 = vmatprep.subr.bf16.mxu1 %v3013_v32  ;;  %s3879_s12 = sld [smem:[#allocation4_spill]]  ;;  %s3271_s26 = smov 48  }
 0x26c   : > { %v3575_v14 = vld [vmem:[#allocation2 + $0x8] sm:$0x3]  ;;  %s3272_s29 = smov 40   ;;  %p2757_p5 = scmp.ne.s32.totalorder %s3384_s22, 1 }
 0x26d   : > { %v959_v16 = vsel %vm958_vm4, %v3575_v14, 0.0 }
 0x26e   : > { %960 = vadd.xlane.f32.xlu0 %v959_v16  ;;  %3016 = vmatpush3.bf16.msra.mxu1 %v3013_v32 }
 0x26f   : > { %v3633_v62 = vld [vmem:[%s3876_s27] sm:$0xff]  ;;  %v3638_v0 = vld [vmem:[%s3876_s27 + $0x8] sm:$0x3] }
 0x2f7   : > { %v957_v17 = vpop.xlane.xlu0 %956 }
 0x2f8   : > { %v963_v18 = vmul.f32 0.03125, %v957_v17 }
 0x2fa   : > { %v965_v19 = vsub.f32 %v3573_v13, %v963_v18 }
 0x2fb   : > { %v961_v20 = vpop.xlane.xlu0 %960 }
 0x2fc   : > { %v964_v21 = vmul.f32 0.03125, %v961_v20  ;;  %v967_v22 = vmul.f32 %v965_v19, %v965_v19 }
 0x2fe   : > { %v966_v23 = vsub.f32 %v3575_v14, %v964_v21  ;;  %v969_v24 = vsel %vm954_vm3, %v967_v22, 0.0 }
 0x2ff   : > { %970 = vadd.xlane.f32.xlu1 %v969_v24 }
 0x300   : > { %v968_v25 = vmul.f32 %v966_v23, %v966_v23 }
 0x302   : > { %v972_v26 = vsel %vm958_vm4, %v968_v25, 0.0 }
 0x303   : > { %973 = vadd.xlane.f32.xlu1 %v972_v26 }
 0x38c   : > { %v971_v33 = vpop.xlane.xlu1 %970 }
 0x38d   : > { %v975_v34 = vmul.f32 0.03125, %v971_v33 }
 0x38f   : > { %v977_v35 = vadd.f32 1e-05, %v975_v34 }
 0x390   : > { %v974_v36 = vpop.xlane.xlu1 %973 }
 0x391   : > { %3200 = vrsqrt.f32 %v977_v35  ;;  %v976_v37 = vmul.f32 0.03125, %v974_v36 }
 0x393   : > { %v978_v38 = vadd.f32 1e-05, %v976_v37 }
 0x395   : > { %3202 = vrsqrt.f32 %v978_v38 }
 0x39b   : > { %v3201_v39 = vpop.eup %3200 }
 0x39c   : > { %v981_v41 = vmul.f32 %v3201_v39, %v965_v19 }
 0x39e   : > { %v990_v43 = vmul.f32 %v2707_v40, %v981_v41 }
 0x39f   : > { %v3203_v44 = vpop.eup %3202 }
 0x3a0   : > { %v982_v45 = vmul.f32 %v3203_v44, %v966_v23  ;;  %v999_v46 = vadd.f32 %v2708_v42, %v990_v43 }
 0x3a2   : > { %v991_v47 = vmul.f32 %v2707_v40, %v982_v45  ;;  %2848 = vmatprep.mubr.msk.f32.mxu1 %vm954_vm3, %v999_v46 }
 0x3a4   : > { %v1000_v48 = vadd.f32 %v2708_v42, %v991_v47 }
 0x3a6   : > { %2849 = vmatmul.mubr.msk.f32.vlgmr.msra.gmra.mrb[0].mxu1 %vm954_vm3, %v1000_v48 }
 0x479   : > { %v2850_v50 = vpop.f32.mrb[0].mxu1 }
 0x47a   : > { %v1090_v51 = vadd.f32 %v2850_v50, %v2709_v49  ;;  %v1084_v52 = vpop.f32.mrb[1].mxu1 }
 0x47b   : > { %v1085_v53 = vadd.f32 %v2709_v49, %v1084_v52 }
 0x47c   : > { %v3615_v56 = vmul.f32 0.35355338, %v1090_v51 }
 0x47d   : > { %v3606_v54 = vpack.i.bf16 %v1090_v51, %v1085_v53  ;;  %v3608_v55 = vmul.f32 0.35355338, %v1085_v53 }
 0x47f   : > { %3161 = vrot.lane.b32.xlu0 %v3606_v54, %s3261_s1  ;;  %2855 = vmatprep.mubr.msk.f32.mxu1 %vm1107_vm5, %v3608_v55  ;;  %s3267_s1 = smov 112  }
 0x483   : > { %3171 = vrot.lane.b32.xlu0 %v3606_v54, %s3262_s2  ;;  %s3268_s2 = smov 72  }
 0x487   : > { %1306 = vrot.lane.b32.xlu0 %v3608_v55, %s3263_s20 }
 0x48b   : > { %1308 = vrot.lane.b32.xlu0 %v3615_v56, %s3263_s20  ;;  %s3269_s20 = smov 104  }
 0x4f1   : > { %v3162_v57 = vpop.permute.xlu0 %3161 }
 0x4f2   : > { %v3164_v58 = vunpack.i.h.bf16 %v3162_v57  ;;  %v3163_v59 = vunpack.i.l.bf16 %v3162_v57 }
 0x4f4   : > { %v3017_v61 = vpack.c.bf16 %v3164_v58, %v3163_v59 }
 0x4f5   : > { %v3172_v20 = vpop.permute.xlu0 %3171 }
 0x4f6   : > { %3019 = vmatprep.subr.msk.bf16.mxu1 %vm3620_vm6, %v3017_v61  ;;  %v3174_v22 = vunpack.i.h.bf16 %v3172_v20  ;;  %v3173_v23 = vunpack.i.l.bf16 %v3172_v20 }
 0x4f7   : > { %3022 = vmatpush3.bf16.xpose.msk.msra.mxu1 %vm3620_vm6, %v3017_v61 }
 0x4f8   : > { %v3029_v28 = vpack.c.bf16 %v3174_v22, %v3173_v23 }
 0x4f9   : > { %v1307_v33 = vpop.permute.xlu0 %1306 }
 0x4fd   : > { %v1309_v34 = vpop.permute.xlu0 %1308 }
 0x4fe   : > { %2856 = vmatmul.mubr.msk.f32.vlgmr.msra.gmra.mrb[2].mxu1 %vm1107_vm5, %v3615_v56 }
 0x5d1   : > { %v2857_v63 = vpop.f32.mrb[2].mxu1 }
 0x5d2   : > { %v1184_v1 = vpop.f32.mrb[3].mxu1  ;;  %v1190_v3 = vadd.f32 %v2857_v63, %v3638_v0 }
 0x5d3   : > { %v1185_v2 = vadd.f32 %v1184_v1, %v3633_v62 }
 0x5d4   : > { %v1198_v5 = vsel %vm1197_vm8, %v1190_v3, -inf }
 0x5d5   : > { %v1194_v4 = vsel %vm1193_vm7, %v1185_v2, -inf }
 0x5d6   : > { %1195 = vmax.xlane.f32.xlu1 %v1194_v4 }
 0x5da   : > { %1199 = vmax.xlane.f32.xlu1 %v1198_v5 }
 0x663   : > { %v1196_v6 = vpop.xlane.xlu1 %1195 }
 0x664   : > { %v1201_v7 = vsub.f32 %v1185_v2, %v1196_v6 }
 0x666   : > { %v1203_v10 = vmul.f32 1.442695, %v1201_v7 }
 0x667   : > { %v1200_v8 = vpop.xlane.xlu1 %1199 }
 0x668   : > { %v1202_v9 = vsub.f32 %v1190_v3, %v1200_v8 }
 0x66a   : > { %v1205_v11 = vmul.f32 1.442695, %v1202_v9 }
 0x66c   : > { %3204 = vpow2.f32 %v1205_v11 }
 0x66d   : > { %3206 = vpow2.f32 %v1203_v10 }
 0x676   : > { %v3205_v12 = vpop.eup %3204 }
 0x677   : > { %v1210_v15 = vsel %vm1197_vm8, %v3205_v12, 0.0  ;;  %v3207_v16 = vpop.eup %3206 }
 0x678   : > { %1211 = vadd.xlane.f32.xlu1 %v1210_v15  ;;  %v1207_v17 = vsel %vm1193_vm7, %v3207_v16, 0.0 }
 0x67c   : > { %1208 = vadd.xlane.f32.xlu1 %v1207_v17  ;;  %v1096_v17 = vld [vmem:[%s3879_s12 + $0x8] sm:$0xff] }
 0x67d   : > { %2879 = vmatprep.subr.mxu0 %v1096_v17 }
 0x67e   : > { %2880 = vmatpush3.msra.mxu0 %v1096_v17 }
 0x68d   : > { %3166 = vrot.lane.b32.xlu1 %v3606_v54, %s3264_s28 }
 0x705   : > { %v1212_v18 = vpop.xlane.xlu1 %1211 }
 0x706   : > { %3208 = vrcp.f32 %v1212_v18  ;;  %v1095_v18 = vld [vmem:[%s3879_s12] sm:$0xff] }
 0x707   : > { %2884 = vmatprep.subr.mxu0 %v1095_v18 }
 0x709   : > { %v1209_v19 = vpop.xlane.xlu1 %1208 }
 0x70a   : > { %3210 = vrcp.f32 %v1209_v19 }
 0x70d   : > { %v3167_v21 = vpop.permute.xlu1 %3166 }
 0x70e   : > { %v3169_v24 = vunpack.i.h.bf16 %v3167_v21  ;;  %v3168_v25 = vunpack.i.l.bf16 %v3167_v21 }
 0x710   : > { %v3023_v27 = vpack.c.bf16 %v3169_v24, %v3168_v25  ;;  %v3209_v29 = vpop.eup %3208 }
 0x711   : > { %v1216_v32 = vmul.f32 %v3209_v29, %v3205_v12 }
 0x712   : > { %3025 = vmatprep.subr.msk.bf16.mxu1 %vm3647_vm11, %v3023_v27 }
 0x713   : > { %3028 = vmatpush3.bf16.msk.msra.mxu1 %vm3647_vm11, %v3023_v27 }
 0x714   : > { %v3211_v30 = vpop.eup %3210  ;;  %3031 = vmatprep.subr.msk.bf16.mxu1 %vm3620_vm6, %v3029_v28 }
 0x715   : > { %v1215_v31 = vmul.f32 %v3211_v30, %v3207_v16 }
 0x717   : > { %2862 = vmatprep.mubr.msk.f32.mxu1 %vm1193_vm7, %v1215_v31 }
 0x718   : > { %2863 = vmatmul.mubr.msk.f32.vlgmr.msra.gmra.mrb[4].mxu1 %vm1193_vm7, %v1216_v32 }
 0x719   : > { %2869 = vmatprep.mubr.msk.f32.mxu1 %vm1107_vm5, %v1307_v33 }
 0x71c   : > { %3034 = vmatpush3.bf16.xpose.msk.msra.mxu1 %vm3620_vm6, %v3029_v28 }
 0x723   : > { %2870 = vmatmul.mubr.msk.f32.vlgmr.msra.gmra.mrb[6].mxu1 %vm1107_vm5, %v1309_v34 }
 0x7eb   : > { %v3663_v35 = vpop.f32.mrb[4].mxu1 }
 0x7ec   : > { %v3665_v36 = vpop.f32.mrb[5].mxu1 }
 0x7f6   : > { %v2871_v37 = vpop.f32.mrb[6].mxu1 }
 0x7f7   : > { %v1394_v38 = vadd.f32 %v2871_v37, %v3638_v0  ;;  %v1388_v39 = vpop.f32.mrb[7].mxu1 }
 0x7f8   : > { %v1389_v40 = vadd.f32 %v1388_v39, %v3633_v62 }
 0x7f9   : > { %v1400_v41 = vsel %vm1197_vm8, %v1394_v38, -inf }
 0x7fa   : > { %1401 = vmax.xlane.f32.xlu0 %v1400_v41  ;;  %v1397_v42 = vsel %vm1193_vm7, %v1389_v40, -inf }
 0x7fb   : > { %1398 = vmax.xlane.f32.xlu1 %v1397_v42 }
 0x80c   : > { %3176 = vrot.lane.b32.xlu1 %v3606_v54, %s3266_s21  ;;  %s3883_s21 = sld [smem:[#allocation11_spill]] (!%p2757_p5) }
 0x810   : > { %1669 = vrot.lane.b32.xlu1 %v3608_v55, %s3267_s1 }
 0x814   : > { %1671 = vrot.lane.b32.xlu1 %v3615_v56, %s3267_s1  ;;  %s3880_s1 = scalar_lea.vmem %s3838_s13, %s3390_s23 }
 0x815   : > { %v2748_v26 = vld [vmem:[%s3880_s1] ss:$0 sm:$0xff] }
 0x818   : > { %3186 = vrot.lane.b32.xlu1 %v3606_v54, %s3268_s2 }
 0x81c   : > { %1955 = vrot.lane.b32.xlu1 %v3615_v56, %s3269_s20 }
 0x887   : > { %v1402_v43 = vpop.xlane.xlu0 %1401 }
 0x888   : > { %v1404_v44 = vsub.f32 %v1394_v38, %v1402_v43  ;;  %v1399_v45 = vpop.xlane.xlu1 %1398 }
 0x889   : > { %v1403_v46 = vsub.f32 %v1389_v40, %v1399_v45 }
 0x88a   : > { %v1407_v47 = vmul.f32 1.442695, %v1404_v44 }
 0x88b   : > { %v1405_v48 = vmul.f32 1.442695, %v1403_v46 }
 0x88c   : > { %3212 = vpow2.f32 %v1407_v47  ;;  %v3177_v49 = vpop.permute.xlu1 %3176 }
 0x88d   : > { %v3179_v50 = vunpack.i.h.bf16 %v3177_v49  ;;  %v3178_v51 = vunpack.i.l.bf16 %v3177_v49  ;;  %3214 = vpow2.f32 %v1405_v48 }
 0x88f   : > { %v3035_v52 = vpack.c.bf16 %v3179_v50, %v3178_v51 }
 0x890   : > { %v1670_v59 = vpop.permute.xlu1 %1669 }
 0x891   : > { %3037 = vmatprep.subr.msk.bf16.mxu1 %vm3647_vm11, %v3035_v52 }
 0x892   : > { %3040 = vmatpush3.bf16.msk.msra.mxu1 %vm3647_vm11, %v3035_v52 }
 0x894   : > { %v1672_v1 = vpop.permute.xlu1 %1671 }
 0x896   : > { %v3213_v53 = vpop.eup %3212 }
 0x897   : > { %v1412_v56 = vsel %vm1197_vm8, %v3213_v53, 0.0  ;;  %v3215_v57 = vpop.eup %3214 }
 0x898   : > { %1413 = vadd.xlane.f32.xlu0 %v1412_v56  ;;  %v1409_v58 = vsel %vm1193_vm7, %v3215_v57, 0.0  ;;  %v3187_v6 = vpop.permute.xlu1 %3186 }
 0x899   : > { %v3189_v9 = vunpack.i.h.bf16 %v3187_v6  ;;  %v3188_v10 = vunpack.i.l.bf16 %v3187_v6 }
 0x89b   : > { %v3053_v12 = vpack.c.bf16 %v3189_v9, %v3188_v10 }
 0x89c   : > { %1410 = vadd.xlane.f32.xlu0 %v1409_v58  ;;  %v1956_v16 = vpop.permute.xlu1 %1955 }
 0x8b2   : > { %3181 = vrot.lane.b32.xlu0 %v3606_v54, %s3270_s24 }
 0x8b6   : > { %1953 = vrot.lane.b32.xlu0 %v3608_v55, %s3269_s20  ;;  %s3884_s20 = sld [smem:[#allocation14_spill]] (!%p2757_p5) }
 0x925   : > { %v1414_v61 = vpop.xlane.xlu0 %1413 }
 0x926   : > { %3216 = vrcp.f32 %v1414_v61 }
 0x929   : > { %v1411_v63 = vpop.xlane.xlu0 %1410 }
 0x92a   : > { %3218 = vrcp.f32 %v1411_v63 }
 0x92d   : > { %v3182_v2 = vpop.permute.xlu0 %3181 }
 0x92e   : > { %v3184_v3 = vunpack.i.h.bf16 %v3182_v2  ;;  %v3183_v4 = vunpack.i.l.bf16 %v3182_v2 }
 0x930   : > { %v3041_v5 = vpack.c.bf16 %v3184_v3, %v3183_v4  ;;  %v3217_v7 = vpop.eup %3216 }
 0x931   : > { %v1418_v11 = vmul.f32 %v3217_v7, %v3213_v53  ;;  %v1954_v15 = vpop.permute.xlu0 %1953 }
 0x932   : > { %3043 = vmatprep.subr.msk.bf16.mxu1 %vm3620_vm6, %v3041_v5 }
 0x934   : > { %v3219_v8 = vpop.eup %3218 }
 0x935   : > { %v1417_v55 = vmul.f32 %v3219_v8, %v3215_v57 }
 0x937   : > { %2876 = vmatprep.mubr.msk.f32.mxu1 %vm1193_vm7, %v1417_v55 }
 0x938   : > { %2877 = vmatmul.mubr.msk.f32.vlgmr.msra.gmra.mrb[8].mxu1 %vm1193_vm7, %v1418_v11 }
 0x939   : > { %3046 = vmatpush3.bf16.xpose.msk.msra.mxu1 %vm3620_vm6, %v3041_v5  ;;  %2893 = vmatprep.mubr.msk.f32.mxu1 %vm1107_vm5, %v1670_v59  ;;  %v1097_v59 = vld [vmem:[%s3879_s12 + $0x10] sm:$0xff] }
 0x93a   : > { %3055 = vmatprep.subr.msk.bf16.mxu1 %vm3620_vm6, %v3053_v12 }
 0x940   : > { %2894 = vmatmul.mubr.msk.f32.vlgmr.msra.gmra.mrb[10].mxu1 %vm1107_vm5, %v1672_v1 }
 0x941   : > { %3058 = vmatpush3.bf16.xpose.msk.msra.mxu1 %vm3620_vm6, %v3053_v12  ;;  %2912 = vmatprep.mubr.msk.f32.mxu1 %vm1107_vm5, %v1954_v15  ;;  %v1098_v12 = vld [vmem:[%s3879_s12 + $0x18] sm:$0xff]  ;;  %s3881_s12 = scalar_lea.vmem %s3842_s17, %s3390_s23 }
 0x948   : > { %2913 = vmatmul.mubr.msk.f32.vlgmr.msra.gmra.mrb[12].mxu1 %vm1107_vm5, %v1956_v16 }
 0xa0b   : > { %v2878_v19 = vpop.f32.mrb[8].mxu1 }
 0xa0c   : > { %v1498_v20 = vpop.f32.mrb[9].mxu1 }
 0xa0d   : > { %2881 = vmatprep.mubr.msk.f32.mxu0 %vm1107_vm5, %v1498_v20 }
 0xa0e   : > { %2882 = vmatmul.mubr.msk.f32.vlgmr.msra.gmra.mrb[0].mxu0 %vm1107_vm5, %v2878_v19 }
 0xa0f   : > { %2886 = vmatprep.mubr.msk.f32.mxu0 %vm1107_vm5, %v3665_v36  ;;  %2885 = vmatpush3.msra.mxu0 %v1095_v18 }
 0xa13   : > { %v2895_v60 = vpop.f32.mrb[10].mxu1 }
 0xa14   : > { %v1757_v21 = vadd.f32 %v2895_v60, %v3638_v0  ;;  %v1751_v22 = vpop.f32.mrb[11].mxu1 }
 0xa15   : > { %v1752_v23 = vadd.f32 %v1751_v22, %v3633_v62 }
 0xa16   : > { %v1763_v24 = vsel %vm1197_vm8, %v1757_v21, -inf  ;;  %2887 = vmatmul.mubr.msk.f32.vlgmr.msra.gmra.mrb[0].mxu0 %vm1107_vm5, %v3663_v35 }
 0xa17   : > { %1764 = vmax.xlane.f32.xlu1 %v1763_v24  ;;  %v1760_v25 = vsel %vm1193_vm7, %v1752_v23, -inf }
 0xa18   : > { %1761 = vmax.xlane.f32.xlu0 %v1760_v25 }
 0xa1b   : > { %v2914_v27 = vpop.f32.mrb[12].mxu1 }
 0xa1c   : > { %v2035_v28 = vpop.f32.mrb[13].mxu1  ;;  %v2041_v30 = vadd.f32 %v2914_v27, %v3638_v0 }
 0xa1d   : > { %v2036_v29 = vadd.f32 %v2035_v28, %v3633_v62 }
 0xa1e   : > { %v2047_v32 = vsel %vm1197_vm8, %v2041_v30, -inf }
 0xa1f   : > { %v2044_v31 = vsel %vm1193_vm7, %v2036_v29, -inf }
 0xa20   : > { %2045 = vmax.xlane.f32.xlu1 %v2044_v31 }
 0xa24   : > { %2048 = vmax.xlane.f32.xlu1 %v2047_v32 }
 0xaa4   : > { %v1765_v33 = vpop.xlane.xlu1 %1764 }
 0xaa5   : > { %v1767_v34 = vsub.f32 %v1757_v21, %v1765_v33  ;;  %v1762_v36 = vpop.xlane.xlu0 %1761 }
 0xaa6   : > { %v1766_v35 = vsub.f32 %v1752_v23, %v1762_v36  ;;  %v2293_v36 = vld [vmem:[%s3430_s10 + $0x8] sm:$0xff] }
 0xaa7   : > { %v1770_v37 = vmul.f32 1.442695, %v1767_v34  ;;  %v2292_v34 = vld [vmem:[%s3430_s10] sm:$0xff] }
 0xaa8   : > { %v1768_v38 = vmul.f32 1.442695, %v1766_v35  ;;  %v3065_v35 = vpack.c.bf16 %v2293_v36, %v2292_v34 }
 0xaa9   : > { %3220 = vpow2.f32 %v1770_v37  ;;  %v2294_v37 = vld [vmem:[%s3430_s10 + $0x10] sm:$0xff] }
 0xaaa   : > { %3222 = vpow2.f32 %v1768_v38  ;;  %3066 = vmatprep.subr.bf16.mxu1 %v3065_v35  ;;  %v2295_v38 = vld [vmem:[%s3430_s10 + $0x18] sm:$0xff] }
 0xaab   : > { %3068 = vmatpush3.bf16.msra.mxu1 %v3065_v35  ;;  %v2756_v35 = vld [vmem:[%s786_s4] ss:$0 sm:$0xff]  ;;  %s3882_s4 = sld [smem:[#allocation10_spill]] (!%p2757_p5) }
 0xaad   : > { %v2046_v39 = vpop.xlane.xlu1 %2045 }
 0xaae   : > { %v2050_v40 = vsub.f32 %v2036_v29, %v2046_v39  ;;  %v3069_v39 = vpack.c.bf16 %v2295_v38, %v2294_v37 }
 0xab0   : > { %v2052_v0 = vmul.f32 1.442695, %v2050_v40  ;;  %3070 = vmatprep.subr.bf16.mxu1 %v3069_v39 }
 0xab1   : > { %v2049_v41 = vpop.xlane.xlu1 %2048  ;;  %3072 = vmatpush3.bf16.msra.mxu1 %v3069_v39 }
 0xab2   : > { %v2051_v62 = vsub.f32 %v2041_v30, %v2049_v41 }
 0xab3   : > { %v3221_v42 = vpop.eup %3220 }
 0xab4   : > { %v2054_v43 = vmul.f32 1.442695, %v2051_v62  ;;  %v1775_v44 = vsel %vm1197_vm8, %v3221_v42, 0.0  ;;  %v3223_v45 = vpop.eup %3222 }
 0xab5   : > { %1776 = vadd.xlane.f32.xlu0 %v1775_v44  ;;  %v1772_v46 = vsel %vm1193_vm7, %v3223_v45, 0.0 }
 0xab6   : > { %3224 = vpow2.f32 %v2054_v43 }
 0xab7   : > { %3226 = vpow2.f32 %v2052_v0 }
 0xab9   : > { %1773 = vadd.xlane.f32.xlu0 %v1772_v46 }
 0xac0   : > { %v3225_v47 = vpop.eup %3224 }
 0xac1   : > { %v2059_v48 = vsel %vm1197_vm8, %v3225_v47, 0.0  ;;  %v3227_v49 = vpop.eup %3226 }
 0xac2   : > { %2060 = vadd.xlane.f32.xlu1 %v2059_v48  ;;  %v2056_v50 = vsel %vm1193_vm7, %v3227_v49, 0.0 }
 0xac6   : > { %2057 = vadd.xlane.f32.xlu1 %v2056_v50 }
 0xacf   : > { %3191 = vrot.lane.b32.xlu0 %v3606_v54, %s3271_s26 }
 0xad7   : > { %3196 = vrot.lane.b32.xlu1 %v3606_v54, %s3272_s29 }
 0xb42   : > { %v1777_v51 = vpop.xlane.xlu0 %1776 }
 0xb43   : > { %3228 = vrcp.f32 %v1777_v51 }
 0xb46   : > { %v1774_v52 = vpop.xlane.xlu0 %1773 }
 0xb47   : > { %3230 = vrcp.f32 %v1774_v52 }
 0xb4a   : > { %v3192_v53 = vpop.permute.xlu0 %3191 }
 0xb4b   : > { %v3194_v56 = vunpack.i.h.bf16 %v3192_v53  ;;  %v3193_v57 = vunpack.i.l.bf16 %v3192_v53 }
 0xb4d   : > { %v3047_v58 = vpack.c.bf16 %v3194_v56, %v3193_v57  ;;  %v3229_v63 = vpop.eup %3228  ;;  %v2400_v56 = vld [vmem:[%s3440_s3] sm:$0xff]  ;;  %v2401_v57 = vld [vmem:[%s3440_s3 + $0x8] sm:$0xff] }
 0xb4e   : > { %v1781_v2 = vmul.f32 %v3229_v63, %v3221_v42 }
 0xb4f   : > { %v2061_v61 = vpop.xlane.xlu1 %2060  ;;  %3049 = vmatprep.subr.msk.bf16.mxu0 %vm3647_vm11, %v3047_v58 }
 0xb50   : > { %3052 = vmatpush3.bf16.msk.msra.mxu0 %vm3647_vm11, %v3047_v58  ;;  %v3073_v58 = vpack.c.bf16 %v2401_v57, %v2400_v56 }
 0xb51   : > { %v3231_v1 = vpop.eup %3230  ;;  %2903 = vmatprep.subr.mxu0 %v1097_v59 }
 0xb52   : > { %v1780_v54 = vmul.f32 %v3231_v1, %v3223_v45  ;;  %v2749_v45 = vld [vmem:[%s767_s6] ss:$0 sm:$0xff] }
 0xb53   : > { %v2058_v3 = vpop.xlane.xlu1 %2057  ;;  %v2404_v1 = vld [vmem:[%s3440_s3 + $0x20] sm:$0xff] }
 0xb54   : > { %2900 = vmatprep.mubr.msk.f32.mxu0 %vm1193_vm7, %v1780_v54  ;;  %3232 = vrcp.f32 %v2058_v3  ;;  %v2405_v54 = vld [vmem:[%s3440_s3 + $0x28] sm:$0xff]  ;;  %v2406_v3 = vld [vmem:[%s3440_s3 + $0x30] sm:$0xff] }
 0xb55   : > { %2901 = vmatmul.mubr.msk.f32.vlgmr.msra.gmra.mrb[2].mxu0 %vm1193_vm7, %v1781_v2  ;;  %3234 = vrcp.f32 %v2061_v61  ;;  %v2403_v61 = vld [vmem:[%s3440_s3 + $0x18] sm:$0xff]  ;;  %v3081_v2 = vpack.c.bf16 %v2405_v54, %v2404_v1 }
 0xb56   : > { %2904 = vmatpush3.msra.mxu0 %v1097_v59  ;;  %v2402_v59 = vld [vmem:[%s3440_s3 + $0x10] sm:$0xff] }
 0xb57   : > { %v3197_v4 = vpop.permute.xlu1 %3196  ;;  %v3077_v63 = vpack.c.bf16 %v2403_v61, %v2402_v59  ;;  %v2758_v59 = vld [vmem:[%s3882_s4] ss:$0 sm:$0xff] (!%p2757_p5) }
 0xb58   : > { %v3199_v5 = vunpack.i.h.bf16 %v3197_v4  ;;  %v3198_v6 = vunpack.i.l.bf16 %v3197_v4  ;;  %v2407_v4 = vld [vmem:[%s3440_s3 + $0x38] sm:$0xff] }
 0xb5a   : > { %v3059_v7 = vpack.c.bf16 %v3199_v5, %v3198_v6  ;;  %v3085_v5 = vpack.c.bf16 %v2407_v4, %v2406_v3  ;;  %v2408_v6 = vld [vmem:[%s3440_s3 + $0x40] sm:$0xff] }
 0xb5c   : > { %3061 = vmatprep.subr.msk.bf16.mxu0 %vm3647_vm11, %v3059_v7 }
 0xb5e   : > { %v3233_v8 = vpop.eup %3232 }
 0xb5f   : > { %v3235_v55 = vpop.eup %3234  ;;  %v2064_v11 = vmul.f32 %v3233_v8, %v3227_v49 }
 0xb60   : > { %v2065_v15 = vmul.f32 %v3235_v55, %v3225_v47  ;;  %v2750_v47 = vld [vmem:[%s770_s30] ss:$0 sm:$0xff] }
 0xc28   : > { %v2902_v9 = vpop.f32.mrb[2].mxu0 }
 0xc29   : > { %v1861_v10 = vpop.f32.mrb[3].mxu0 }
 0xc2a   : > { %2905 = vmatprep.mubr.msk.f32.mxu0 %vm1107_vm5, %v1861_v10  ;;  %v2411_v10 = vld [vmem:[%s3440_s3 + $0x58] sm:$0xff] }
 0xc2b   : > { %2906 = vmatmul.mubr.msk.f32.vlgmr.msra.gmra.mrb[0].mxu0 %vm1107_vm5, %v2902_v9  ;;  %v2410_v9 = vld [vmem:[%s3440_s3 + $0x50] sm:$0xff] }
 0xc2c   : > { %3064 = vmatpush3.bf16.msk.msra.mxu0 %vm3647_vm11, %v3059_v7  ;;  %2919 = vmatprep.mubr.msk.f32.mxu0 %vm1193_vm7, %v2064_v11  ;;  %v2409_v7 = vld [vmem:[%s3440_s3 + $0x48] sm:$0xff]  ;;  %v3093_v55 = vpack.c.bf16 %v2411_v10, %v2410_v9  ;;  %v2412_v11 = vld [vmem:[%s3440_s3 + $0x60] sm:$0xff] }
 0xc2d   : > { %2922 = vmatprep.subr.mxu0 %v1098_v12  ;;  %v3089_v8 = vpack.c.bf16 %v2409_v7, %v2408_v6 }
 0xc2f   : > { %2920 = vmatmul.mubr.msk.f32.vlgmr.msra.gmra.mrb[4].mxu0 %vm1193_vm7, %v2065_v15 }
 0xc30   : > { %2923 = vmatpush3.msra.mxu0 %v1098_v12  ;;  %v2413_v12 = vld [vmem:[%s3440_s3 + $0x68] sm:$0xff] }
 0xc31   : > { %3074 = vmatprep.subr.bf16.mxu0 %v3073_v58  ;;  %v3097_v15 = vpack.c.bf16 %v2413_v12, %v2412_v11 }
 0xd02   : > { %v2921_v16 = vpop.f32.mrb[4].mxu0 }
 0xd03   : > { %v2145_v17 = vpop.f32.mrb[5].mxu0 }
 0xd04   : > { %2924 = vmatprep.mubr.msk.f32.mxu0 %vm1107_vm5, %v2145_v17  ;;  %v2415_v17 = vld [vmem:[%s3440_s3 + $0x78] sm:$0xff] }
 0xd05   : > { %2925 = vmatmul.mubr.msk.f32.vlgmr.msra.gmra.mrb[0].mxu0 %vm1107_vm5, %v2921_v16  ;;  %v2414_v16 = vld [vmem:[%s3440_s3 + $0x70] sm:$0xff] }
 0xd06   : > { %3076 = vmatpush3.bf16.msra.mxu0 %v3073_v58 }
 0xd07   : > { %3078 = vmatprep.subr.bf16.mxu0 %v3077_v63 }
 0xd0a   : > { %3080 = vmatpush3.bf16.msra.mxu0 %v3077_v63  ;;  %v2759_v63 = vld [vmem:[%s3883_s21] ss:$0 sm:$0xff] (!%p2757_p5) }
 0xd0b   : > { %3082 = vmatprep.subr.bf16.mxu0 %v3081_v2 }
 0xd0e   : > { %3084 = vmatpush3.bf16.msra.mxu0 %v3081_v2 }
 0xd0f   : > { %3086 = vmatprep.subr.bf16.mxu0 %v3085_v5 }
 0xd12   : > { %3088 = vmatpush3.bf16.msra.mxu0 %v3085_v5 }
 0xd13   : > { %3090 = vmatprep.subr.bf16.mxu0 %v3089_v8 }
 0xd16   : > { %3092 = vmatpush3.bf16.msra.mxu0 %v3089_v8 }
 0xd17   : > { %3094 = vmatprep.subr.bf16.mxu0 %v3093_v55 }
 0xd1a   : > { %3096 = vmatpush3.bf16.msra.mxu0 %v3093_v55 }
 0xd1b   : > { %3098 = vmatprep.subr.bf16.mxu0 %v3097_v15 }
 0xd1e   : > { %3100 = vmatpush3.bf16.msra.mxu0 %v3097_v15 }
 0xdd8   : > { %v2926_v18 = vpop.f32.mrb[0].mxu0 }
 0xdd9   : > { %v2238_v19 = vadd.f32 %v2926_v18, %v3575_v14  ;;  %v2226_v20 = vpop.f32.mrb[1].mxu0  ;;  %v3101_v18 = vpack.c.bf16 %v2415_v17, %v2414_v16 }
 0xdda   : > { %v2237_v60 = vadd.f32 %v2226_v20, %v3573_v13 }
 0xddb   : > { %v3745_v21 = vadd.f32 %v2748_v26, %v2238_v19  ;;  %3102 = vmatprep.subr.bf16.mxu0 %v3101_v18 }
 0xddc   : > { %v3747_v22 = vadd.f32 %v2748_v26, %v2237_v60  ;;  %3104 = vmatpush3.bf16.msra.mxu0 %v3101_v18  ;;  %v2751_v26 = vld [vmem:[%s3881_s12] ss:$0 sm:$0xff] }
 0xddd   : > { %v2251_v23 = vsel %vm958_vm4, %v3745_v21, 0.0 }
 0xdde   : > { %2252 = vadd.xlane.f32.xlu1 %v2251_v23  ;;  %v2248_v24 = vsel %vm954_vm3, %v3747_v22, 0.0 }
 0xddf   : > { %2249 = vadd.xlane.f32.xlu0 %v2248_v24 }
 0xe6b   : > { %v2253_v25 = vpop.xlane.xlu1 %2252 }
 0xe6c   : > { %v2255_v27 = vmul.f32 0.03125, %v2253_v25  ;;  %v2250_v14 = vpop.xlane.xlu0 %2249 }
 0xe6d   : > { %v2254_v13 = vmul.f32 0.03125, %v2250_v14 }
 0xe6e   : > { %v2257_v28 = vsub.f32 %v3745_v21, %v2255_v27 }
 0xe6f   : > { %v2256_v29 = vsub.f32 %v3747_v22, %v2254_v13 }
 0xe70   : > { %v2259_v32 = vmul.f32 %v2257_v28, %v2257_v28 }
 0xe71   : > { %v2258_v30 = vmul.f32 %v2256_v29, %v2256_v29 }
 0xe72   : > { %v2263_v33 = vsel %vm958_vm4, %v2259_v32, 0.0 }
 0xe73   : > { %v2260_v31 = vsel %vm954_vm3, %v2258_v30, 0.0 }
 0xe74   : > { %2261 = vadd.xlane.f32.xlu0 %v2260_v31 }
 0xe78   : > { %2264 = vadd.xlane.f32.xlu0 %v2263_v33 }
 0xf01   : > { %v2262_v40 = vpop.xlane.xlu0 %2261 }
 0xf02   : > { %v2266_v41 = vmul.f32 0.03125, %v2262_v40 }
 0xf04   : > { %v2268_v62 = vadd.f32 1e-05, %v2266_v41 }
 0xf05   : > { %v2265_v42 = vpop.xlane.xlu0 %2264 }
 0xf06   : > { %3236 = vrsqrt.f32 %v2268_v62  ;;  %v2267_v0 = vmul.f32 0.03125, %v2265_v42 }
 0xf08   : > { %v2269_v43 = vadd.f32 1e-05, %v2267_v0 }
 0xf0a   : > { %3238 = vrsqrt.f32 %v2269_v43 }
 0xf10   : > { %v3237_v44 = vpop.eup %3236 }
 0xf11   : > { %v2272_v46 = vmul.f32 %v3237_v44, %v2256_v29 }
 0xf13   : > { %v2281_v48 = vmul.f32 %v2749_v45, %v2272_v46 }
 0xf14   : > { %v3239_v49 = vpop.eup %3238 }
 0xf15   : > { %v2273_v50 = vmul.f32 %v3239_v49, %v2257_v28  ;;  %v2290_v51 = vadd.f32 %v2750_v47, %v2281_v48 }
 0xf17   : > { %v2282_v52 = vmul.f32 %v2749_v45, %v2273_v50  ;;  %2935 = vmatprep.mubr.msk.f32.mxu1 %vm954_vm3, %v2290_v51 }
 0xf19   : > { %v2291_v53 = vadd.f32 %v2750_v47, %v2282_v52 }
 0xf1b   : > { %2936 = vmatmul.mubr.msk.f32.vlgmr.msra.gmra.mrb[14].mxu1 %vm954_vm3, %v2291_v53 }
 0xfee   : > { %v2937_v19 = vpop.f32.mrb[14].mxu1 }
 0xfef   : > { %v2381_v20 = vadd.f32 %v2937_v19, %v2751_v26  ;;  %v2375_v60 = vpop.f32.mrb[15].mxu1 }
 0xff0   : > { %v2376_v23 = vadd.f32 %v2751_v26, %v2375_v60 }
 0xff1   : > { %v2755_v24 = vmul.f32 -1.702, %v2381_v20 }
 0xff2   : > { %v2754_v25 = vmul.f32 -1.702, %v2376_v23 }
 0xff3   : > { %v2390_v27 = vmul.f32 1.442695, %v2755_v24 }
 0xff4   : > { %v2388_v14 = vmul.f32 1.442695, %v2754_v25 }
 0xff5   : > { %3240 = vpow2.f32 %v2390_v27 }
 0xff6   : > { %3242 = vpow2.f32 %v2388_v14 }
 0xfff   : > { %v3241_v13 = vpop.eup %3240 }
0x1000   : > { %v3243_v28 = vpop.eup %3242  ;;  %v2393_v29 = vadd.f32 1.0, %v3241_v13 }
0x1001   : > { %v2392_v30 = vadd.f32 1.0, %v3243_v28 }
0x1002   : > { %3244 = vrcp.f32 %v2393_v29 }
0x1003   : > { %3246 = vrcp.f32 %v2392_v30 }
0x100c   : > { %v3245_v31 = vpop.eup %3244 }
0x100d   : > { %v3247_v32 = vpop.eup %3246  ;;  %v2399_v34 = vmul.f32 %v3245_v31, %v2381_v20 }
0x100e   : > { %v2398_v33 = vmul.f32 %v3247_v32, %v2376_v23 }
0x1010   : > { %2970 = vmatprep.mubr.f32.mxu0 %v2398_v33 }
0x1011   : > { %2971 = vmatmul.mubr.f32.vlgmr.msra.gmra.mrb[6].mxu0 %v2399_v34 }
0x10e4   : > { %v2972_v36 = vpop.f32.mrb[6].mxu0  ;;  %2507 = sbr.rel (%p2757_p5) target bundleno = 4648 (0x1228), region = 108 }
0x10e5   : > { %v2492_v37 = vadd.f32 %v2972_v36, %v3745_v21  ;;  %v2482_v38 = vpop.f32.mrb[7].mxu0 }
0x10e6   : > { %v2491_v39 = vadd.f32 %v2482_v38, %v3747_v22 }
0x10e7   : > { %v2501_v40 = vadd.f32 %v2756_v35, %v2492_v37 }
0x10e8   : > { %v2500_v41 = vadd.f32 %v2756_v35, %v2491_v39 }
0x10e9   : > { %2503 = vst.msk [vmem:[#allocation2 + $0x8] sm:$0x3] %vm958_vm4, %v2501_v40  ;;  %v2511_v42 = vsel (!%p2757_p5), %vm958_vm4, %v2501_v40, 0.0 }
0x10ea   : > { %2502 = vst.msk [vmem:[#allocation2] sm:$0xff] %vm954_vm3, %v2500_v41  ;;  %v2508_v62 = vsel (!%p2757_p5), %vm954_vm3, %v2500_v41, 0.0 }
0x10eb   : > { %2509 = vadd.xlane.f32.xlu0 %v2508_v62 }
0x10ef   : > { %2512 = vadd.xlane.f32.xlu0 %v2511_v42 }
0x1178   : > { %v2510_v0 = vpop.xlane.xlu0 %2509 }
0x1179   : > { %v2514_v21 = vmul.f32 0.03125, %v2510_v0 }
0x117b   : > { %v2516_v43 = vsub.f32 %v2500_v41, %v2514_v21 }
0x117c   : > { %v2513_v44 = vpop.xlane.xlu0 %2512 }
0x117d   : > { %v2515_v22 = vmul.f32 0.03125, %v2513_v44  ;;  %v2518_v45 = vmul.f32 %v2516_v43, %v2516_v43 }
0x117f   : > { %v2517_v46 = vsub.f32 %v2501_v40, %v2515_v22  ;;  %v2520_v47 = vsel %vm954_vm3, %v2518_v45, 0.0 }
0x1180   : > { %2521 = vadd.xlane.f32.xlu1 %v2520_v47 }
0x1181   : > { %v2519_v48 = vmul.f32 %v2517_v46, %v2517_v46 }
0x1183   : > { %v2523_v49 = vsel %vm958_vm4, %v2519_v48, 0.0 }
0x1184   : > { %2524 = vadd.xlane.f32.xlu1 %v2523_v49 }
0x120d   : > { %v2522_v50 = vpop.xlane.xlu1 %2521 }
0x120e   : > { %v2526_v51 = vmul.f32 0.03125, %v2522_v50 }
0x1210   : > { %v2528_v52 = vadd.f32 1e-05, %v2526_v51 }
0x1211   : > { %v2525_v53 = vpop.xlane.xlu1 %2524 }
0x1212   : > { %3248 = vrsqrt.f32 %v2528_v52  ;;  %v2527_v56 = vmul.f32 0.03125, %v2525_v53 }
0x1214   : > { %v2529_v57 = vadd.f32 1e-05, %v2527_v56 }
0x1216   : > { %3250 = vrsqrt.f32 %v2529_v57 }
0x121c   : > { %v3249_v58 = vpop.eup %3248 }
0x121d   : > { %v2532_v61 = vmul.f32 %v3249_v58, %v2516_v43 }
0x121f   : > { %v2541_v1 = vmul.f32 %v2758_v59, %v2532_v61 }
0x1220   : > { %v3251_v54 = vpop.eup %3250 }
0x1221   : > { %v2550_v2 = vadd.f32 %v2759_v63, %v2541_v1  ;;  %v2533_v3 = vmul.f32 %v3251_v54, %v2517_v46 }
0x1223   : > { %2552 = vst.msk [vmem:[%s3884_s20] sm:$0xff] %vm954_vm3, %v2550_v2  ;;  %v2542_v4 = vmul.f32 %v2758_v59, %v2533_v3 }
0x1225   : > { %v2551_v5 = vadd.f32 %v2759_v63, %v2542_v4 }
0x1227   : > { %2553 = vst.msk [vmem:[%s3884_s20 + $0x8] sm:$0x3] %vm958_vm4, %v2551_v5 }
0x1228 PF: > { %s3885_s6 = sld [smem:[#allocation3_spill]] }
0x122e   : > { %s30_s1 = sadd.s32 1, %s3885_s6  }
0x122f   : > { %p27_p6 = scmp.ge.s32.totalorder %s30_s1, 4  }
0x1231   :  { %29 = sbr.rel (!%p27_p6) target bundleno = 11 (0xb), region = 167 }

</bundles_post_ra>
